<compile_context>
chip_gen: v7x
topology: tpu7x:2x2x1
jax: 0.10.0
libtpu: 0.0.40
codegen_flags: <defaults>
</compile_context>

<pallas_src>
import functools

import jax
import jax.numpy as jnp
from jax.experimental import pallas as pl
from jax.experimental.pallas import tpu as pltpu


# ----------------------------------------------------------------------------
# Fused kernel: bidirectional GRU + flatten quirk + MLP head.
# Gate order (r, z, n) matches torch.nn.GRU weight layout.
# ----------------------------------------------------------------------------
def _disc_kernel(T, Bp, B, H,
                 x_ref, wih_ref, bih_ref,
                 whhf_ref, whhb_ref, bhnf_ref, bhnb_ref,
                 w1_ref, b1_ref, w2_ref, b2_ref, w3r_ref, b3_ref,
                 o_ref, gi_scr):
    f32 = jnp.float32
    H2, H3 = 2 * H, 3 * H

    # ---- hoisted, fused (both-direction) input projection: one bf16 matmul
    # over all timesteps; folded biases added once.  Staged to VMEM scratch.
    gi_scr[...] = (jnp.dot(x_ref[...], wih_ref[...],
                           preferred_element_type=f32) + bih_ref[...])

    whh_f = whhf_ref[...]                               # (H, 3H)
    whh_b = whhb_ref[...]
    bhn_f = jnp.broadcast_to(bhnf_ref[...], (Bp, H))    # hoisted broadcasts
    bhn_b = jnp.broadcast_to(bhnb_ref[...], (Bp, H))

    def step(t, carry):
        h_f, h_b = carry
        mf = pl.multiple_of(t * Bp, 8)                  # forward reads step t
        mb = pl.multiple_of((T - 1 - t) * Bp, 8)        # backward reads T-1-t
        g_f = gi_scr[pl.ds(mf, Bp), :]                  # (Bp, 6H)
        g_b = gi_scr[pl.ds(mb, Bp), :]
        gtf = g_f[:, 0:H3]                              # forward gates (Bp,3H)
        gtb = g_b[:, H3:2 * H3]                         # backward gates (Bp,3H)

        # ONE fused recurrent matmul per direction (r|z|n together).
        gh_f = jnp.dot(h_f, whh_f, preferred_element_type=f32)
        gh_b = jnp.dot(h_b, whh_b, preferred_element_type=f32)

        rz_f = jax.nn.sigmoid(gtf[:, :H2] + gh_f[:, :H2])
        rz_b = jax.nn.sigmoid(gtb[:, :H2] + gh_b[:, :H2])
        n_f = jnp.tanh(gtf[:, H2:] + rz_f[:, :H] * (gh_f[:, H2:] + bhn_f))
        n_b = jnp.tanh(gtb[:, H2:] + rz_b[:, :H] * (gh_b[:, H2:] + bhn_b))
        z_f = rz_f[:, H:]
        z_b = rz_b[:, H:]
        return ((1.0 - z_f) * n_f + z_f * h_f,
                (1.0 - z_b) * n_b + z_b * h_b)

    h0 = jnp.zeros((Bp, H), f32)                        # init_hidden: zeros
    h_f, h_b = jax.lax.fori_loop(0, T, step, (h0, h0), unroll=min(T, 8))

    # ---- torch's rnn_final_hidden.view(batch, -1) on the (2, B, H) stack ----
    # flat[i] = concat(stack[2i], stack[2i+1]) with stack = [h_f[:B]; h_b[:B]].
    # Vectorized as a single tiny permutation matmul (exact 0/1 selection);
    # padded rows (>= B) come out zero, so the whole output slab stays defined.
    stacked = jnp.concatenate([h_f, h_b], axis=0)       # (2Bp, H)
    n2 = 2 * Bp
    kk = jax.lax.broadcasted_iota(jnp.int32, (n2, n2), 0)
    jj = jax.lax.broadcasted_iota(jnp.int32, (n2, n2), 1)
    row_i = jnp.where(kk < Bp, kk, kk - Bp)             # output row index
    base = jnp.where(kk < Bp, 2 * row_i, 2 * row_i + 1)  # true stack index
    src = jnp.where(base < B, base, base - B + Bp)      # row inside `stacked`
    perm = jnp.where(jnp.logical_and(jj == src, row_i < B), 1.0, 0.0).astype(f32)
    sel = jnp.dot(perm, stacked, preferred_element_type=f32)    # (2Bp, H)
    flat = jnp.concatenate([sel[0:Bp], sel[Bp:n2]], axis=-1)    # (Bp, 2H)

    # ---- fused MLP head (dropout = identity in eval mode) ----
    h1 = jnp.maximum(
        jnp.dot(flat, w1_ref[...], preferred_element_type=f32) + b1_ref[...], 0.0)
    h2 = jnp.maximum(
        jnp.dot(h1, w2_ref[...], preferred_element_type=f32) + b2_ref[...], 0.0)
    # final (L -> 1) layer as VPU multiply + lane reduction (avoid N=1 matmul)
    logits = jnp.sum(h2 * w3r_ref[...], axis=-1, keepdims=True) + b3_ref[...]
    scores = jax.nn.sigmoid(logits)                     # (Bp, 1)

    # lane-dense output slab; wrapper slices [:B, :1]
    o_ref[...] = jnp.broadcast_to(scores, (Bp, o_ref.shape[-1]))


# ----------------------------------------------------------------------------
# One-time parameter pre-bake: concat / transpose / bias fold / bf16 cast.
# ----------------------------------------------------------------------------
def prepare_params(params):
    H = params["whh_f"].shape[0]
    zero_n = jnp.zeros((1, H), jnp.float32)
    # Fold the recurrent r/z biases into the hoisted projection bias; the
    # n-gate recurrent bias stays separate (it is gated by r inside the loop).
    bias_f = params["bih_f"] + jnp.concatenate(
        [params["bhh_f"][:, :2 * H], zero_n], axis=-1)
    bias_b = params["bih_b"] + jnp.concatenate(
        [params["bhh_b"][:, :2 * H], zero_n], axis=-1)
    return {
        "wih": jnp.concatenate([params["wih_f"], params["wih_b"]],
                               axis=1).astype(jnp.bfloat16),     # (D, 6H) bf16
        "bih": jnp.concatenate([bias_f, bias_b], axis=-1),       # (1, 6H)
        "whh_f": params["whh_f"],                                # (H, 3H)
        "whh_b": params["whh_b"],
        "bhn_f": params["bhh_f"][:, 2 * H:],                     # (1, H)
        "bhn_b": params["bhh_b"][:, 2 * H:],
        "w1": params["w1"], "b1": params["b1"],
        "w2": params["w2"], "b2": params["b2"],
        "w3r": jnp.transpose(params["w3"]),                      # (1, L)
        "b3": params["b3"],
    }


# ----------------------------------------------------------------------------
# Full forward pass (single pallas_call).
# ----------------------------------------------------------------------------
@jax.jit
def discriminator_forward(hidden_states, prep):
    """hidden_states: (B, T, D) batch-first float32, as in the PyTorch module."""
    B, T, D = hidden_states.shape
    H = prep["whh_f"].shape[0]
    L = prep["w1"].shape[1]
    Bp = ((B + 7) // 8) * 8                      # pad batch to sublane multiple

    # Time-major, batch-padded, flattened so the whole input projection is one
    # matmul; cast to bf16 for the MXU-native hoisted projection.  The backward
    # direction indexes time reversed inside the kernel (no reversed copy).
    x_tm = jnp.transpose(hidden_states, (1, 0, 2)).astype(jnp.float32)  # (T,B,D)
    x_pad = jnp.pad(x_tm, ((0, 0), (0, Bp - B), (0, 0)))                # (T,Bp,D)
    x_flat = jnp.reshape(x_pad, (T * Bp, D)).astype(jnp.bfloat16)       # (T*Bp,D)

    # Explicit scoped-VMEM sizing (slab grows with T).
    vmem_need = (T * Bp * D * 2 + T * Bp * 6 * H * 4 + D * 6 * H * 2
                 + 2 * H * 3 * H * 4 + (8 * H) * 4
                 + (2 * H * L + L * L + 3 * L + 1) * 4 + Bp * 128 * 4)
    vlim = int(min(max(4 * vmem_need + (4 << 20), 32 << 20), 64 << 20))

    kernel = functools.partial(_disc_kernel, T, Bp, B, H)
    out = pl.pallas_call(
        kernel,
        out_shape=jax.ShapeDtypeStruct((Bp, 128), jnp.float32),
        scratch_shapes=[pltpu.VMEM((T * Bp, 6 * H), jnp.float32)],
        compiler_params=pltpu.CompilerParams(vmem_limit_bytes=vlim),
    )(x_flat, prep["wih"], prep["bih"],
      prep["whh_f"], prep["whh_b"], prep["bhn_f"], prep["bhn_b"],
      prep["w1"], prep["b1"], prep["w2"], prep["b2"], prep["w3r"], prep["b3"])
    return out[:B, :1]


# ----------------------------------------------------------------------------
# Pure-JAX reference (lax.scan GRU) for correctness checking.
# ----------------------------------------------------------------------------
def _gru_ref(x_tbd, wih_t, whh_t, bih, bhh, cast_bf16):
    H = whh_t.shape[0]
    w_in = wih_t.astype(jnp.bfloat16) if cast_bf16 else wih_t

    def step(h, x):
        xx = x.astype(jnp.bfloat16) if cast_bf16 else x
        gi = jnp.dot(xx, w_in, preferred_element_type=jnp.float32) + bih
        gh = h @ whh_t + bhh
        i_r, i_z, i_n = jnp.split(gi, 3, axis=-1)
        h_r, h_z, h_n = jnp.split(gh, 3, axis=-1)
        r = jax.nn.sigmoid(i_r + h_r)
        z = jax.nn.sigmoid(i_z + h_z)
        n = jnp.tanh(i_n + r * h_n)
        return (1.0 - z) * n + z * h, None

    h0 = jnp.zeros((x_tbd.shape[1], H), jnp.float32)
    h_final, _ = jax.lax.scan(step, h0, x_tbd)
    return h_final


def _reference_forward(hidden_states, params, cast_bf16=False):
    B = hidden_states.shape[0]
    x_f = jnp.transpose(hidden_states, (1, 0, 2))
    x_b = jnp.transpose(hidden_states[:, ::-1, :], (1, 0, 2))
    h_fwd = _gru_ref(x_f, params["wih_f"], params["whh_f"],
                     params["bih_f"], params["bhh_f"], cast_bf16)
    h_bwd = _gru_ref(x_b, params["wih_b"], params["whh_b"],
                     params["bih_b"], params["bhh_b"], cast_bf16)
    flat = jnp.reshape(jnp.stack([h_fwd, h_bwd], axis=0), (B, -1))
    h1 = jnp.maximum(flat @ params["w1"] + params["b1"], 0.0)
    h2 = jnp.maximum(h1 @ params["w2"] + params["b2"], 0.0)
    return jax.nn.sigmoid(h2 @ params["w3"] + params["b3"])


# ----------------------------------------------------------------------------
# Deterministic parameter init (shapes from nn.GRU / nn.Linear in __init__).
# ----------------------------------------------------------------------------
def init_params(key, decoder_hidden_size, discriminator_hidden_size,
                discriminator_linear_size):
    D, H, L = decoder_hidden_size, discriminator_hidden_size, discriminator_linear_size
    keys = jax.random.split(key, 14)
    s_gru = 1.0 / jnp.sqrt(H)
    s_l1 = 1.0 / jnp.sqrt(2 * H)
    s_l2 = 1.0 / jnp.sqrt(L)

    def u(k, shape, scale):
        return jax.random.uniform(k, shape, jnp.float32, -scale, scale)

    return {
        # GRU, forward direction (torch stores (3H,D)/(3H,H); we keep transposed)
        "wih_f": u(keys[0], (D, 3 * H), s_gru),
        "whh_f": u(keys[1], (H, 3 * H), s_gru),
        "bih_f": u(keys[2], (1, 3 * H), s_gru),
        "bhh_f": u(keys[3], (1, 3 * H), s_gru),
        # GRU, reverse direction
        "wih_b": u(keys[4], (D, 3 * H), s_gru),
        "whh_b": u(keys[5], (H, 3 * H), s_gru),
        "bih_b": u(keys[6], (1, 3 * H), s_gru),
        "bhh_b": u(keys[7], (1, 3 * H), s_gru),
        # Linear stack (transposed for x @ W)
        "w1": u(keys[8], (2 * H, L), s_l1),
        "b1": u(keys[9], (1, L), s_l1),
        "w2": u(keys[10], (L, L), s_l2),
        "b2": u(keys[11], (1, L), s_l2),
        "w3": u(keys[12], (L, 1), s_l2),
        "b3": u(keys[13], (1, 1), s_l2),
    }


if __name__ == "__main__":
    # Small, module-consistent sizes.
    B, T = 2, 8
    decoder_hidden_size = 32          # GRU input feature size
    discriminator_hidden_size = 32    # GRU hidden size (per direction)
    discriminator_linear_size = 64

    key = jax.random.PRNGKey(0)
    k_x, k_p = jax.random.split(key)
    hidden_states = jax.random.normal(
        k_x, (B, T, decoder_hidden_size), dtype=jnp.float32)
    params = init_params(k_p, decoder_hidden_size,
                         discriminator_hidden_size, discriminator_linear_size)
    prep = prepare_params(params)

    scores = discriminator_forward(hidden_states, prep)
    scores = jax.block_until_ready(scores)

    assert scores.shape == (B, 1)
    assert bool(jnp.all(jnp.isfinite(scores)))

    # Matched-precision reference (same bf16 hoisted input projection): tight.
    ref_matched = _reference_forward(hidden_states, params, cast_bf16=True)
    assert jnp.allclose(scores, ref_matched, atol=1e-3, rtol=1e-3)

    # Full-f32 reference: loose (only diff is bf16 cast of the projection).
    ref_f32 = _reference_forward(hidden_states, params, cast_bf16=False)
    assert jnp.allclose(scores, ref_f32, atol=5e-2)

    print("KERNEL_OK")
</pallas_src>

<mosaic_0001>
module attributes {stable_mosaic.version = 11 : i64} {
  func.func @_disc_kernel(%arg0: memref<64x32xbf16, #tpu.memory_space<vmem>>, %arg1: memref<32x192xbf16, #tpu.memory_space<vmem>>, %arg2: memref<1x192xf32, #tpu.memory_space<vmem>>, %arg3: memref<32x96xf32, #tpu.memory_space<vmem>>, %arg4: memref<32x96xf32, #tpu.memory_space<vmem>>, %arg5: memref<1x32xf32, #tpu.memory_space<vmem>>, %arg6: memref<1x32xf32, #tpu.memory_space<vmem>>, %arg7: memref<64x64xf32, #tpu.memory_space<vmem>>, %arg8: memref<1x64xf32, #tpu.memory_space<vmem>>, %arg9: memref<64x64xf32, #tpu.memory_space<vmem>>, %arg10: memref<1x64xf32, #tpu.memory_space<vmem>>, %arg11: memref<1x64xf32, #tpu.memory_space<vmem>>, %arg12: memref<1x1xf32, #tpu.memory_space<vmem>>, %arg13: memref<8x128xf32, #tpu.memory_space<vmem>>, %arg14: memref<64x192xf32, #tpu.memory_space<vmem>>) attributes {dimension_semantics = [], scalar_prefetch = 0 : i64, scratch_operands = 1 : i64, tpu.core_type = #tpu.core_type<tc>} {
    %c0 = arith.constant 0 : index
    %c0_0 = arith.constant 0 : index
    %0 = vector.load %arg0[%c0, %c0_0] : memref<64x32xbf16, #tpu.memory_space<vmem>>, vector<64x32xbf16>
    %c0_1 = arith.constant 0 : index
    %c0_2 = arith.constant 0 : index
    %1 = vector.load %arg1[%c0_1, %c0_2] : memref<32x192xbf16, #tpu.memory_space<vmem>>, vector<32x192xbf16>
    %cst = arith.constant dense<0.000000e+00> : vector<64x192xf32>
    %2 = tpu.matmul %0, %1, %cst {dimension_numbers = #tpu.dot_dimension_numbers<[1], [0], [0], [1], [0, 0, 1, 1], [], []>} : vector<64x32xbf16>, vector<32x192xbf16>, vector<64x192xf32> -> vector<64x192xf32>
    %c0_3 = arith.constant 0 : index
    %c0_4 = arith.constant 0 : index
    %3 = vector.load %arg2[%c0_3, %c0_4] : memref<1x192xf32, #tpu.memory_space<vmem>>, vector<1x192xf32>
    %4 = vector.broadcast %3 : vector<1x192xf32> to vector<64x192xf32>
    %5 = arith.addf %2, %4 : vector<64x192xf32>
    %c0_5 = arith.constant 0 : index
    %c0_6 = arith.constant 0 : index
    %6 = vector.load %arg14[%c0_5, %c0_6] : memref<64x192xf32, #tpu.memory_space<vmem>>, vector<64x192xf32>
    tpu.vector_store %arg14[%c0_5, %c0_6], %5 {strides = array<i32>} : memref<64x192xf32, #tpu.memory_space<vmem>>, vector<64x192xf32>,
    %c0_7 = arith.constant 0 : index
    %c0_8 = arith.constant 0 : index
    %7 = vector.load %arg3[%c0_7, %c0_8] : memref<32x96xf32, #tpu.memory_space<vmem>>, vector<32x96xf32>
    %c0_9 = arith.constant 0 : index
    %c0_10 = arith.constant 0 : index
    %8 = vector.load %arg4[%c0_9, %c0_10] : memref<32x96xf32, #tpu.memory_space<vmem>>, vector<32x96xf32>
    %c0_11 = arith.constant 0 : index
    %c0_12 = arith.constant 0 : index
    %9 = vector.load %arg5[%c0_11, %c0_12] : memref<1x32xf32, #tpu.memory_space<vmem>>, vector<1x32xf32>
    %10 = vector.shape_cast %9 : vector<1x32xf32> to vector<1x32xf32>
    %11 = vector.broadcast %10 : vector<1x32xf32> to vector<8x32xf32>
    %c0_13 = arith.constant 0 : index
    %c0_14 = arith.constant 0 : index
    %12 = vector.load %arg6[%c0_13, %c0_14] : memref<1x32xf32, #tpu.memory_space<vmem>>, vector<1x32xf32>
    %13 = vector.shape_cast %12 : vector<1x32xf32> to vector<1x32xf32>
    %14 = vector.broadcast %13 : vector<1x32xf32> to vector<8x32xf32>
    %cst_15 = arith.constant 0.000000e+00 : f32
    %15 = vector.broadcast %cst_15 : f32 to vector<8x32xf32>
    %c0_i32 = arith.constant 0 : i32
    %c8_i32 = arith.constant 8 : i32
    %16 = arith.muli %c0_i32, %c8_i32 : i32
    %17 = tpu.assume_multiple %16, 8 : i32
    %c7_i32 = arith.constant 7 : i32
    %18 = arith.subi %c7_i32, %c0_i32 : i32
    %c8_i32_16 = arith.constant 8 : i32
    %19 = arith.muli %18, %c8_i32_16 : i32
    %20 = tpu.assume_multiple %19, 8 : i32
    %21 = arith.index_cast %17 : i32 to index
    %c0_17 = arith.constant 0 : index
    %22 = vector.load %arg14[%21, %c0_17] : memref<64x192xf32, #tpu.memory_space<vmem>>, vector<8x192xf32>
    %23 = arith.index_cast %20 : i32 to index
    %c0_18 = arith.constant 0 : index
    %24 = vector.load %arg14[%23, %c0_18] : memref<64x192xf32, #tpu.memory_space<vmem>>, vector<8x192xf32>
    %25 = vector.extract_strided_slice %22 {offsets = [0, 0], sizes = [8, 96], strides = [1, 1]} : vector<8x192xf32> to vector<8x96xf32>
    %26 = vector.extract_strided_slice %24 {offsets = [0, 96], sizes = [8, 96], strides = [1, 1]} : vector<8x192xf32> to vector<8x96xf32>
    %cst_19 = arith.constant dense<0.000000e+00> : vector<8x96xf32>
    %27 = tpu.matmul %15, %7, %cst_19 {dimension_numbers = #tpu.dot_dimension_numbers<[1], [0], [0], [1], [0, 0, 1, 1], [], []>} : vector<8x32xf32>, vector<32x96xf32>, vector<8x96xf32> -> vector<8x96xf32>
    %cst_20 = arith.constant dense<0.000000e+00> : vector<8x96xf32>
    %28 = tpu.matmul %15, %8, %cst_20 {dimension_numbers = #tpu.dot_dimension_numbers<[1], [0], [0], [1], [0, 0, 1, 1], [], []>} : vector<8x32xf32>, vector<32x96xf32>, vector<8x96xf32> -> vector<8x96xf32>
    %29 = vector.extract_strided_slice %25 {offsets = [0, 0], sizes = [8, 64], strides = [1, 1]} : vector<8x96xf32> to vector<8x64xf32>
    %30 = vector.extract_strided_slice %27 {offsets = [0, 0], sizes = [8, 64], strides = [1, 1]} : vector<8x96xf32> to vector<8x64xf32>
    %31 = arith.addf %29, %30 : vector<8x64xf32>
    %32 = arith.negf %31 : vector<8x64xf32>
    %33 = math.exp %32 : vector<8x64xf32>
    %cst_21 = arith.constant 1.000000e+00 : f32
    %34 = vector.broadcast %cst_21 : f32 to vector<8x64xf32>
    %35 = arith.addf %34, %33 : vector<8x64xf32>
    %36 = arith.divf %34, %35 : vector<8x64xf32>
    %37 = vector.extract_strided_slice %26 {offsets = [0, 0], sizes = [8, 64], strides = [1, 1]} : vector<8x96xf32> to vector<8x64xf32>
    %38 = vector.extract_strided_slice %28 {offsets = [0, 0], sizes = [8, 64], strides = [1, 1]} : vector<8x96xf32> to vector<8x64xf32>
    %39 = arith.addf %37, %38 : vector<8x64xf32>
    %40 = arith.negf %39 : vector<8x64xf32>
    %41 = math.exp %40 : vector<8x64xf32>
    %cst_22 = arith.constant 1.000000e+00 : f32
    %42 = vector.broadcast %cst_22 : f32 to vector<8x64xf32>
    %43 = arith.addf %42, %41 : vector<8x64xf32>
    %44 = arith.divf %42, %43 : vector<8x64xf32>
    %45 = vector.extract_strided_slice %25 {offsets = [0, 64], sizes = [8, 32], strides = [1, 1]} : vector<8x96xf32> to vector<8x32xf32>
    %46 = vector.extract_strided_slice %36 {offsets = [0, 0], sizes = [8, 32], strides = [1, 1]} : vector<8x64xf32> to vector<8x32xf32>
    %47 = vector.extract_strided_slice %27 {offsets = [0, 64], sizes = [8, 32], strides = [1, 1]} : vector<8x96xf32> to vector<8x32xf32>
    %48 = arith.addf %47, %11 : vector<8x32xf32>
    %49 = arith.mulf %46, %48 : vector<8x32xf32>
    %50 = arith.addf %45, %49 : vector<8x32xf32>
    %51 = math.tanh %50 : vector<8x32xf32>
    %52 = vector.extract_strided_slice %26 {offsets = [0, 64], sizes = [8, 32], strides = [1, 1]} : vector<8x96xf32> to vector<8x32xf32>
    %53 = vector.extract_strided_slice %44 {offsets = [0, 0], sizes = [8, 32], strides = [1, 1]} : vector<8x64xf32> to vector<8x32xf32>
    %54 = vector.extract_strided_slice %28 {offsets = [0, 64], sizes = [8, 32], strides = [1, 1]} : vector<8x96xf32> to vector<8x32xf32>
    %55 = arith.addf %54, %14 : vector<8x32xf32>
    %56 = arith.mulf %53, %55 : vector<8x32xf32>
    %57 = arith.addf %52, %56 : vector<8x32xf32>
    %58 = math.tanh %57 : vector<8x32xf32>
    %59 = vector.extract_strided_slice %36 {offsets = [0, 32], sizes = [8, 32], strides = [1, 1]} : vector<8x64xf32> to vector<8x32xf32>
    %60 = vector.extract_strided_slice %44 {offsets = [0, 32], sizes = [8, 32], strides = [1, 1]} : vector<8x64xf32> to vector<8x32xf32>
    %cst_23 = arith.constant 1.000000e+00 : f32
    %61 = vector.broadcast %cst_23 : f32 to vector<8x32xf32>
    %62 = arith.subf %61, %59 : vector<8x32xf32>
    %63 = arith.mulf %62, %51 : vector<8x32xf32>
    %64 = arith.mulf %59, %15 : vector<8x32xf32>
    %65 = arith.addf %63, %64 : vector<8x32xf32>
    %cst_24 = arith.constant 1.000000e+00 : f32
    %66 = vector.broadcast %cst_24 : f32 to vector<8x32xf32>
    %67 = arith.subf %66, %60 : vector<8x32xf32>
    %68 = arith.mulf %67, %58 : vector<8x32xf32>
    %69 = arith.mulf %60, %15 : vector<8x32xf32>
    %70 = arith.addf %68, %69 : vector<8x32xf32>
    %c1_i32 = arith.constant 1 : i32
    %c8_i32_25 = arith.constant 8 : i32
    %71 = arith.muli %c1_i32, %c8_i32_25 : i32
    %72 = tpu.assume_multiple %71, 8 : i32
    %c7_i32_26 = arith.constant 7 : i32
    %73 = arith.subi %c7_i32_26, %c1_i32 : i32
    %c8_i32_27 = arith.constant 8 : i32
    %74 = arith.muli %73, %c8_i32_27 : i32
    %75 = tpu.assume_multiple %74, 8 : i32
    %76 = arith.index_cast %72 : i32 to index
    %c0_28 = arith.constant 0 : index
    %77 = vector.load %arg14[%76, %c0_28] : memref<64x192xf32, #tpu.memory_space<vmem>>, vector<8x192xf32>
    %78 = arith.index_cast %75 : i32 to index
    %c0_29 = arith.constant 0 : index
    %79 = vector.load %arg14[%78, %c0_29] : memref<64x192xf32, #tpu.memory_space<vmem>>, vector<8x192xf32>
    %80 = vector.extract_strided_slice %77 {offsets = [0, 0], sizes = [8, 96], strides = [1, 1]} : vector<8x192xf32> to vector<8x96xf32>
    %81 = vector.extract_strided_slice %79 {offsets = [0, 96], sizes = [8, 96], strides = [1, 1]} : vector<8x192xf32> to vector<8x96xf32>
    %cst_30 = arith.constant dense<0.000000e+00> : vector<8x96xf32>
    %82 = tpu.matmul %65, %7, %cst_30 {dimension_numbers = #tpu.dot_dimension_numbers<[1], [0], [0], [1], [0, 0, 1, 1], [], []>} : vector<8x32xf32>, vector<32x96xf32>, vector<8x96xf32> -> vector<8x96xf32>
    %cst_31 = arith.constant dense<0.000000e+00> : vector<8x96xf32>
    %83 = tpu.matmul %70, %8, %cst_31 {dimension_numbers = #tpu.dot_dimension_numbers<[1], [0], [0], [1], [0, 0, 1, 1], [], []>} : vector<8x32xf32>, vector<32x96xf32>, vector<8x96xf32> -> vector<8x96xf32>
    %84 = vector.extract_strided_slice %80 {offsets = [0, 0], sizes = [8, 64], strides = [1, 1]} : vector<8x96xf32> to vector<8x64xf32>
    %85 = vector.extract_strided_slice %82 {offsets = [0, 0], sizes = [8, 64], strides = [1, 1]} : vector<8x96xf32> to vector<8x64xf32>
    %86 = arith.addf %84, %85 : vector<8x64xf32>
    %87 = arith.negf %86 : vector<8x64xf32>
    %88 = math.exp %87 : vector<8x64xf32>
    %cst_32 = arith.constant 1.000000e+00 : f32
    %89 = vector.broadcast %cst_32 : f32 to vector<8x64xf32>
    %90 = arith.addf %89, %88 : vector<8x64xf32>
    %91 = arith.divf %89, %90 : vector<8x64xf32>
    %92 = vector.extract_strided_slice %81 {offsets = [0, 0], sizes = [8, 64], strides = [1, 1]} : vector<8x96xf32> to vector<8x64xf32>
    %93 = vector.extract_strided_slice %83 {offsets = [0, 0], sizes = [8, 64], strides = [1, 1]} : vector<8x96xf32> to vector<8x64xf32>
    %94 = arith.addf %92, %93 : vector<8x64xf32>
    %95 = arith.negf %94 : vector<8x64xf32>
    %96 = math.exp %95 : vector<8x64xf32>
    %cst_33 = arith.constant 1.000000e+00 : f32
    %97 = vector.broadcast %cst_33 : f32 to vector<8x64xf32>
    %98 = arith.addf %97, %96 : vector<8x64xf32>
    %99 = arith.divf %97, %98 : vector<8x64xf32>
    %100 = vector.extract_strided_slice %80 {offsets = [0, 64], sizes = [8, 32], strides = [1, 1]} : vector<8x96xf32> to vector<8x32xf32>
    %101 = vector.extract_strided_slice %91 {offsets = [0, 0], sizes = [8, 32], strides = [1, 1]} : vector<8x64xf32> to vector<8x32xf32>
    %102 = vector.extract_strided_slice %82 {offsets = [0, 64], sizes = [8, 32], strides = [1, 1]} : vector<8x96xf32> to vector<8x32xf32>
    %103 = arith.addf %102, %11 : vector<8x32xf32>
    %104 = arith.mulf %101, %103 : vector<8x32xf32>
    %105 = arith.addf %100, %104 : vector<8x32xf32>
    %106 = math.tanh %105 : vector<8x32xf32>
    %107 = vector.extract_strided_slice %81 {offsets = [0, 64], sizes = [8, 32], strides = [1, 1]} : vector<8x96xf32> to vector<8x32xf32>
    %108 = vector.extract_strided_slice %99 {offsets = [0, 0], sizes = [8, 32], strides = [1, 1]} : vector<8x64xf32> to vector<8x32xf32>
    %109 = vector.extract_strided_slice %83 {offsets = [0, 64], sizes = [8, 32], strides = [1, 1]} : vector<8x96xf32> to vector<8x32xf32>
    %110 = arith.addf %109, %14 : vector<8x32xf32>
    %111 = arith.mulf %108, %110 : vector<8x32xf32>
    %112 = arith.addf %107, %111 : vector<8x32xf32>
    %113 = math.tanh %112 : vector<8x32xf32>
    %114 = vector.extract_strided_slice %91 {offsets = [0, 32], sizes = [8, 32], strides = [1, 1]} : vector<8x64xf32> to vector<8x32xf32>
    %115 = vector.extract_strided_slice %99 {offsets = [0, 32], sizes = [8, 32], strides = [1, 1]} : vector<8x64xf32> to vector<8x32xf32>
    %cst_34 = arith.constant 1.000000e+00 : f32
    %116 = vector.broadcast %cst_34 : f32 to vector<8x32xf32>
    %117 = arith.subf %116, %114 : vector<8x32xf32>
    %118 = arith.mulf %117, %106 : vector<8x32xf32>
    %119 = arith.mulf %114, %65 : vector<8x32xf32>
    %120 = arith.addf %118, %119 : vector<8x32xf32>
    %cst_35 = arith.constant 1.000000e+00 : f32
    %121 = vector.broadcast %cst_35 : f32 to vector<8x32xf32>
    %122 = arith.subf %121, %115 : vector<8x32xf32>
    %123 = arith.mulf %122, %113 : vector<8x32xf32>
    %124 = arith.mulf %115, %70 : vector<8x32xf32>
    %125 = arith.addf %123, %124 : vector<8x32xf32>
    %c2_i32 = arith.constant 2 : i32
    %c8_i32_36 = arith.constant 8 : i32
    %126 = arith.muli %c2_i32, %c8_i32_36 : i32
    %127 = tpu.assume_multiple %126, 8 : i32
    %c7_i32_37 = arith.constant 7 : i32
    %128 = arith.subi %c7_i32_37, %c2_i32 : i32
    %c8_i32_38 = arith.constant 8 : i32
    %129 = arith.muli %128, %c8_i32_38 : i32
    %130 = tpu.assume_multiple %129, 8 : i32
    %131 = arith.index_cast %127 : i32 to index
    %c0_39 = arith.constant 0 : index
    %132 = vector.load %arg14[%131, %c0_39] : memref<64x192xf32, #tpu.memory_space<vmem>>, vector<8x192xf32>
    %133 = arith.index_cast %130 : i32 to index
    %c0_40 = arith.constant 0 : index
    %134 = vector.load %arg14[%133, %c0_40] : memref<64x192xf32, #tpu.memory_space<vmem>>, vector<8x192xf32>
    %135 = vector.extract_strided_slice %132 {offsets = [0, 0], sizes = [8, 96], strides = [1, 1]} : vector<8x192xf32> to vector<8x96xf32>
    %136 = vector.extract_strided_slice %134 {offsets = [0, 96], sizes = [8, 96], strides = [1, 1]} : vector<8x192xf32> to vector<8x96xf32>
    %cst_41 = arith.constant dense<0.000000e+00> : vector<8x96xf32>
    %137 = tpu.matmul %120, %7, %cst_41 {dimension_numbers = #tpu.dot_dimension_numbers<[1], [0], [0], [1], [0, 0, 1, 1], [], []>} : vector<8x32xf32>, vector<32x96xf32>, vector<8x96xf32> -> vector<8x96xf32>
    %cst_42 = arith.constant dense<0.000000e+00> : vector<8x96xf32>
    %138 = tpu.matmul %125, %8, %cst_42 {dimension_numbers = #tpu.dot_dimension_numbers<[1], [0], [0], [1], [0, 0, 1, 1], [], []>} : vector<8x32xf32>, vector<32x96xf32>, vector<8x96xf32> -> vector<8x96xf32>
    %139 = vector.extract_strided_slice %135 {offsets = [0, 0], sizes = [8, 64], strides = [1, 1]} : vector<8x96xf32> to vector<8x64xf32>
    %140 = vector.extract_strided_slice %137 {offsets = [0, 0], sizes = [8, 64], strides = [1, 1]} : vector<8x96xf32> to vector<8x64xf32>
    %141 = arith.addf %139, %140 : vector<8x64xf32>
    %142 = arith.negf %141 : vector<8x64xf32>
    %143 = math.exp %142 : vector<8x64xf32>
    %cst_43 = arith.constant 1.000000e+00 : f32
    %144 = vector.broadcast %cst_43 : f32 to vector<8x64xf32>
    %145 = arith.addf %144, %143 : vector<8x64xf32>
    %146 = arith.divf %144, %145 : vector<8x64xf32>
    %147 = vector.extract_strided_slice %136 {offsets = [0, 0], sizes = [8, 64], strides = [1, 1]} : vector<8x96xf32> to vector<8x64xf32>
    %148 = vector.extract_strided_slice %138 {offsets = [0, 0], sizes = [8, 64], strides = [1, 1]} : vector<8x96xf32> to vector<8x64xf32>
    %149 = arith.addf %147, %148 : vector<8x64xf32>
    %150 = arith.negf %149 : vector<8x64xf32>
    %151 = math.exp %150 : vector<8x64xf32>
    %cst_44 = arith.constant 1.000000e+00 : f32
    %152 = vector.broadcast %cst_44 : f32 to vector<8x64xf32>
    %153 = arith.addf %152, %151 : vector<8x64xf32>
    %154 = arith.divf %152, %153 : vector<8x64xf32>
    %155 = vector.extract_strided_slice %135 {offsets = [0, 64], sizes = [8, 32], strides = [1, 1]} : vector<8x96xf32> to vector<8x32xf32>
    %156 = vector.extract_strided_slice %146 {offsets = [0, 0], sizes = [8, 32], strides = [1, 1]} : vector<8x64xf32> to vector<8x32xf32>
    %157 = vector.extract_strided_slice %137 {offsets = [0, 64], sizes = [8, 32], strides = [1, 1]} : vector<8x96xf32> to vector<8x32xf32>
    %158 = arith.addf %157, %11 : vector<8x32xf32>
    %159 = arith.mulf %156, %158 : vector<8x32xf32>
    %160 = arith.addf %155, %159 : vector<8x32xf32>
    %161 = math.tanh %160 : vector<8x32xf32>
    %162 = vector.extract_strided_slice %136 {offsets = [0, 64], sizes = [8, 32], strides = [1, 1]} : vector<8x96xf32> to vector<8x32xf32>
    %163 = vector.extract_strided_slice %154 {offsets = [0, 0], sizes = [8, 32], strides = [1, 1]} : vector<8x64xf32> to vector<8x32xf32>
    %164 = vector.extract_strided_slice %138 {offsets = [0, 64], sizes = [8, 32], strides = [1, 1]} : vector<8x96xf32> to vector<8x32xf32>
    %165 = arith.addf %164, %14 : vector<8x32xf32>
    %166 = arith.mulf %163, %165 : vector<8x32xf32>
    %167 = arith.addf %162, %166 : vector<8x32xf32>
    %168 = math.tanh %167 : vector<8x32xf32>
    %169 = vector.extract_strided_slice %146 {offsets = [0, 32], sizes = [8, 32], strides = [1, 1]} : vector<8x64xf32> to vector<8x32xf32>
    %170 = vector.extract_strided_slice %154 {offsets = [0, 32], sizes = [8, 32], strides = [1, 1]} : vector<8x64xf32> to vector<8x32xf32>
    %cst_45 = arith.constant 1.000000e+00 : f32
    %171 = vector.broadcast %cst_45 : f32 to vector<8x32xf32>
    %172 = arith.subf %171, %169 : vector<8x32xf32>
    %173 = arith.mulf %172, %161 : vector<8x32xf32>
    %174 = arith.mulf %169, %120 : vector<8x32xf32>
    %175 = arith.addf %173, %174 : vector<8x32xf32>
    %cst_46 = arith.constant 1.000000e+00 : f32
    %176 = vector.broadcast %cst_46 : f32 to vector<8x32xf32>
    %177 = arith.subf %176, %170 : vector<8x32xf32>
    %178 = arith.mulf %177, %168 : vector<8x32xf32>
    %179 = arith.mulf %170, %125 : vector<8x32xf32>
    %180 = arith.addf %178, %179 : vector<8x32xf32>
    %c3_i32 = arith.constant 3 : i32
    %c8_i32_47 = arith.constant 8 : i32
    %181 = arith.muli %c3_i32, %c8_i32_47 : i32
    %182 = tpu.assume_multiple %181, 8 : i32
    %c7_i32_48 = arith.constant 7 : i32
    %183 = arith.subi %c7_i32_48, %c3_i32 : i32
    %c8_i32_49 = arith.constant 8 : i32
    %184 = arith.muli %183, %c8_i32_49 : i32
    %185 = tpu.assume_multiple %184, 8 : i32
    %186 = arith.index_cast %182 : i32 to index
    %c0_50 = arith.constant 0 : index
    %187 = vector.load %arg14[%186, %c0_50] : memref<64x192xf32, #tpu.memory_space<vmem>>, vector<8x192xf32>
    %188 = arith.index_cast %185 : i32 to index
    %c0_51 = arith.constant 0 : index
    %189 = vector.load %arg14[%188, %c0_51] : memref<64x192xf32, #tpu.memory_space<vmem>>, vector<8x192xf32>
    %190 = vector.extract_strided_slice %187 {offsets = [0, 0], sizes = [8, 96], strides = [1, 1]} : vector<8x192xf32> to vector<8x96xf32>
    %191 = vector.extract_strided_slice %189 {offsets = [0, 96], sizes = [8, 96], strides = [1, 1]} : vector<8x192xf32> to vector<8x96xf32>
    %cst_52 = arith.constant dense<0.000000e+00> : vector<8x96xf32>
    %192 = tpu.matmul %175, %7, %cst_52 {dimension_numbers = #tpu.dot_dimension_numbers<[1], [0], [0], [1], [0, 0, 1, 1], [], []>} : vector<8x32xf32>, vector<32x96xf32>, vector<8x96xf32> -> vector<8x96xf32>
    %cst_53 = arith.constant dense<0.000000e+00> : vector<8x96xf32>
    %193 = tpu.matmul %180, %8, %cst_53 {dimension_numbers = #tpu.dot_dimension_numbers<[1], [0], [0], [1], [0, 0, 1, 1], [], []>} : vector<8x32xf32>, vector<32x96xf32>, vector<8x96xf32> -> vector<8x96xf32>
    %194 = vector.extract_strided_slice %190 {offsets = [0, 0], sizes = [8, 64], strides = [1, 1]} : vector<8x96xf32> to vector<8x64xf32>
    %195 = vector.extract_strided_slice %192 {offsets = [0, 0], sizes = [8, 64], strides = [1, 1]} : vector<8x96xf32> to vector<8x64xf32>
    %196 = arith.addf %194, %195 : vector<8x64xf32>
    %197 = arith.negf %196 : vector<8x64xf32>
    %198 = math.exp %197 : vector<8x64xf32>
    %cst_54 = arith.constant 1.000000e+00 : f32
    %199 = vector.broadcast %cst_54 : f32 to vector<8x64xf32>
    %200 = arith.addf %199, %198 : vector<8x64xf32>
    %201 = arith.divf %199, %200 : vector<8x64xf32>
    %202 = vector.extract_strided_slice %191 {offsets = [0, 0], sizes = [8, 64], strides = [1, 1]} : vector<8x96xf32> to vector<8x64xf32>
    %203 = vector.extract_strided_slice %193 {offsets = [0, 0], sizes = [8, 64], strides = [1, 1]} : vector<8x96xf32> to vector<8x64xf32>
    %204 = arith.addf %202, %203 : vector<8x64xf32>
    %205 = arith.negf %204 : vector<8x64xf32>
    %206 = math.exp %205 : vector<8x64xf32>
    %cst_55 = arith.constant 1.000000e+00 : f32
    %207 = vector.broadcast %cst_55 : f32 to vector<8x64xf32>
    %208 = arith.addf %207, %206 : vector<8x64xf32>
    %209 = arith.divf %207, %208 : vector<8x64xf32>
    %210 = vector.extract_strided_slice %190 {offsets = [0, 64], sizes = [8, 32], strides = [1, 1]} : vector<8x96xf32> to vector<8x32xf32>
    %211 = vector.extract_strided_slice %201 {offsets = [0, 0], sizes = [8, 32], strides = [1, 1]} : vector<8x64xf32> to vector<8x32xf32>
    %212 = vector.extract_strided_slice %192 {offsets = [0, 64], sizes = [8, 32], strides = [1, 1]} : vector<8x96xf32> to vector<8x32xf32>
    %213 = arith.addf %212, %11 : vector<8x32xf32>
    %214 = arith.mulf %211, %213 : vector<8x32xf32>
    %215 = arith.addf %210, %214 : vector<8x32xf32>
    %216 = math.tanh %215 : vector<8x32xf32>
    %217 = vector.extract_strided_slice %191 {offsets = [0, 64], sizes = [8, 32], strides = [1, 1]} : vector<8x96xf32> to vector<8x32xf32>
    %218 = vector.extract_strided_slice %209 {offsets = [0, 0], sizes = [8, 32], strides = [1, 1]} : vector<8x64xf32> to vector<8x32xf32>
    %219 = vector.extract_strided_slice %193 {offsets = [0, 64], sizes = [8, 32], strides = [1, 1]} : vector<8x96xf32> to vector<8x32xf32>
    %220 = arith.addf %219, %14 : vector<8x32xf32>
    %221 = arith.mulf %218, %220 : vector<8x32xf32>
    %222 = arith.addf %217, %221 : vector<8x32xf32>
    %223 = math.tanh %222 : vector<8x32xf32>
    %224 = vector.extract_strided_slice %201 {offsets = [0, 32], sizes = [8, 32], strides = [1, 1]} : vector<8x64xf32> to vector<8x32xf32>
    %225 = vector.extract_strided_slice %209 {offsets = [0, 32], sizes = [8, 32], strides = [1, 1]} : vector<8x64xf32> to vector<8x32xf32>
    %cst_56 = arith.constant 1.000000e+00 : f32
    %226 = vector.broadcast %cst_56 : f32 to vector<8x32xf32>
    %227 = arith.subf %226, %224 : vector<8x32xf32>
    %228 = arith.mulf %227, %216 : vector<8x32xf32>
    %229 = arith.mulf %224, %175 : vector<8x32xf32>
    %230 = arith.addf %228, %229 : vector<8x32xf32>
    %cst_57 = arith.constant 1.000000e+00 : f32
    %231 = vector.broadcast %cst_57 : f32 to vector<8x32xf32>
    %232 = arith.subf %231, %225 : vector<8x32xf32>
    %233 = arith.mulf %232, %223 : vector<8x32xf32>
    %234 = arith.mulf %225, %180 : vector<8x32xf32>
    %235 = arith.addf %233, %234 : vector<8x32xf32>
    %c4_i32 = arith.constant 4 : i32
    %c8_i32_58 = arith.constant 8 : i32
    %236 = arith.muli %c4_i32, %c8_i32_58 : i32
    %237 = tpu.assume_multiple %236, 8 : i32
    %c7_i32_59 = arith.constant 7 : i32
    %238 = arith.subi %c7_i32_59, %c4_i32 : i32
    %c8_i32_60 = arith.constant 8 : i32
    %239 = arith.muli %238, %c8_i32_60 : i32
    %240 = tpu.assume_multiple %239, 8 : i32
    %241 = arith.index_cast %237 : i32 to index
    %c0_61 = arith.constant 0 : index
    %242 = vector.load %arg14[%241, %c0_61] : memref<64x192xf32, #tpu.memory_space<vmem>>, vector<8x192xf32>
    %243 = arith.index_cast %240 : i32 to index
    %c0_62 = arith.constant 0 : index
    %244 = vector.load %arg14[%243, %c0_62] : memref<64x192xf32, #tpu.memory_space<vmem>>, vector<8x192xf32>
    %245 = vector.extract_strided_slice %242 {offsets = [0, 0], sizes = [8, 96], strides = [1, 1]} : vector<8x192xf32> to vector<8x96xf32>
    %246 = vector.extract_strided_slice %244 {offsets = [0, 96], sizes = [8, 96], strides = [1, 1]} : vector<8x192xf32> to vector<8x96xf32>
    %cst_63 = arith.constant dense<0.000000e+00> : vector<8x96xf32>
    %247 = tpu.matmul %230, %7, %cst_63 {dimension_numbers = #tpu.dot_dimension_numbers<[1], [0], [0], [1], [0, 0, 1, 1], [], []>} : vector<8x32xf32>, vector<32x96xf32>, vector<8x96xf32> -> vector<8x96xf32>
    %cst_64 = arith.constant dense<0.000000e+00> : vector<8x96xf32>
    %248 = tpu.matmul %235, %8, %cst_64 {dimension_numbers = #tpu.dot_dimension_numbers<[1], [0], [0], [1], [0, 0, 1, 1], [], []>} : vector<8x32xf32>, vector<32x96xf32>, vector<8x96xf32> -> vector<8x96xf32>
    %249 = vector.extract_strided_slice %245 {offsets = [0, 0], sizes = [8, 64], strides = [1, 1]} : vector<8x96xf32> to vector<8x64xf32>
    %250 = vector.extract_strided_slice %247 {offsets = [0, 0], sizes = [8, 64], strides = [1, 1]} : vector<8x96xf32> to vector<8x64xf32>
    %251 = arith.addf %249, %250 : vector<8x64xf32>
    %252 = arith.negf %251 : vector<8x64xf32>
    %253 = math.exp %252 : vector<8x64xf32>
    %cst_65 = arith.constant 1.000000e+00 : f32
    %254 = vector.broadcast %cst_65 : f32 to vector<8x64xf32>
    %255 = arith.addf %254, %253 : vector<8x64xf32>
    %256 = arith.divf %254, %255 : vector<8x64xf32>
    %257 = vector.extract_strided_slice %246 {offsets = [0, 0], sizes = [8, 64], strides = [1, 1]} : vector<8x96xf32> to vector<8x64xf32>
    %258 = vector.extract_strided_slice %248 {offsets = [0, 0], sizes = [8, 64], strides = [1, 1]} : vector<8x96xf32> to vector<8x64xf32>
    %259 = arith.addf %257, %258 : vector<8x64xf32>
    %260 = arith.negf %259 : vector<8x64xf32>
    %261 = math.exp %260 : vector<8x64xf32>
    %cst_66 = arith.constant 1.000000e+00 : f32
    %262 = vector.broadcast %cst_66 : f32 to vector<8x64xf32>
    %263 = arith.addf %262, %261 : vector<8x64xf32>
    %264 = arith.divf %262, %263 : vector<8x64xf32>
    %265 = vector.extract_strided_slice %245 {offsets = [0, 64], sizes = [8, 32], strides = [1, 1]} : vector<8x96xf32> to vector<8x32xf32>
    %266 = vector.extract_strided_slice %256 {offsets = [0, 0], sizes = [8, 32], strides = [1, 1]} : vector<8x64xf32> to vector<8x32xf32>
    %267 = vector.extract_strided_slice %247 {offsets = [0, 64], sizes = [8, 32], strides = [1, 1]} : vector<8x96xf32> to vector<8x32xf32>
    %268 = arith.addf %267, %11 : vector<8x32xf32>
    %269 = arith.mulf %266, %268 : vector<8x32xf32>
    %270 = arith.addf %265, %269 : vector<8x32xf32>
    %271 = math.tanh %270 : vector<8x32xf32>
    %272 = vector.extract_strided_slice %246 {offsets = [0, 64], sizes = [8, 32], strides = [1, 1]} : vector<8x96xf32> to vector<8x32xf32>
    %273 = vector.extract_strided_slice %264 {offsets = [0, 0], sizes = [8, 32], strides = [1, 1]} : vector<8x64xf32> to vector<8x32xf32>
    %274 = vector.extract_strided_slice %248 {offsets = [0, 64], sizes = [8, 32], strides = [1, 1]} : vector<8x96xf32> to vector<8x32xf32>
    %275 = arith.addf %274, %14 : vector<8x32xf32>
    %276 = arith.mulf %273, %275 : vector<8x32xf32>
    %277 = arith.addf %272, %276 : vector<8x32xf32>
    %278 = math.tanh %277 : vector<8x32xf32>
    %279 = vector.extract_strided_slice %256 {offsets = [0, 32], sizes = [8, 32], strides = [1, 1]} : vector<8x64xf32> to vector<8x32xf32>
    %280 = vector.extract_strided_slice %264 {offsets = [0, 32], sizes = [8, 32], strides = [1, 1]} : vector<8x64xf32> to vector<8x32xf32>
    %cst_67 = arith.constant 1.000000e+00 : f32
    %281 = vector.broadcast %cst_67 : f32 to vector<8x32xf32>
    %282 = arith.subf %281, %279 : vector<8x32xf32>
    %283 = arith.mulf %282, %271 : vector<8x32xf32>
    %284 = arith.mulf %279, %230 : vector<8x32xf32>
    %285 = arith.addf %283, %284 : vector<8x32xf32>
    %cst_68 = arith.constant 1.000000e+00 : f32
    %286 = vector.broadcast %cst_68 : f32 to vector<8x32xf32>
    %287 = arith.subf %286, %280 : vector<8x32xf32>
    %288 = arith.mulf %287, %278 : vector<8x32xf32>
    %289 = arith.mulf %280, %235 : vector<8x32xf32>
    %290 = arith.addf %288, %289 : vector<8x32xf32>
    %c5_i32 = arith.constant 5 : i32
    %c8_i32_69 = arith.constant 8 : i32
    %291 = arith.muli %c5_i32, %c8_i32_69 : i32
    %292 = tpu.assume_multiple %291, 8 : i32
    %c7_i32_70 = arith.constant 7 : i32
    %293 = arith.subi %c7_i32_70, %c5_i32 : i32
    %c8_i32_71 = arith.constant 8 : i32
    %294 = arith.muli %293, %c8_i32_71 : i32
    %295 = tpu.assume_multiple %294, 8 : i32
    %296 = arith.index_cast %292 : i32 to index
    %c0_72 = arith.constant 0 : index
    %297 = vector.load %arg14[%296, %c0_72] : memref<64x192xf32, #tpu.memory_space<vmem>>, vector<8x192xf32>
    %298 = arith.index_cast %295 : i32 to index
    %c0_73 = arith.constant 0 : index
    %299 = vector.load %arg14[%298, %c0_73] : memref<64x192xf32, #tpu.memory_space<vmem>>, vector<8x192xf32>
    %300 = vector.extract_strided_slice %297 {offsets = [0, 0], sizes = [8, 96], strides = [1, 1]} : vector<8x192xf32> to vector<8x96xf32>
    %301 = vector.extract_strided_slice %299 {offsets = [0, 96], sizes = [8, 96], strides = [1, 1]} : vector<8x192xf32> to vector<8x96xf32>
    %cst_74 = arith.constant dense<0.000000e+00> : vector<8x96xf32>
    %302 = tpu.matmul %285, %7, %cst_74 {dimension_numbers = #tpu.dot_dimension_numbers<[1], [0], [0], [1], [0, 0, 1, 1], [], []>} : vector<8x32xf32>, vector<32x96xf32>, vector<8x96xf32> -> vector<8x96xf32>
    %cst_75 = arith.constant dense<0.000000e+00> : vector<8x96xf32>
    %303 = tpu.matmul %290, %8, %cst_75 {dimension_numbers = #tpu.dot_dimension_numbers<[1], [0], [0], [1], [0, 0, 1, 1], [], []>} : vector<8x32xf32>, vector<32x96xf32>, vector<8x96xf32> -> vector<8x96xf32>
    %304 = vector.extract_strided_slice %300 {offsets = [0, 0], sizes = [8, 64], strides = [1, 1]} : vector<8x96xf32> to vector<8x64xf32>
    %305 = vector.extract_strided_slice %302 {offsets = [0, 0], sizes = [8, 64], strides = [1, 1]} : vector<8x96xf32> to vector<8x64xf32>
    %306 = arith.addf %304, %305 : vector<8x64xf32>
    %307 = arith.negf %306 : vector<8x64xf32>
    %308 = math.exp %307 : vector<8x64xf32>
    %cst_76 = arith.constant 1.000000e+00 : f32
    %309 = vector.broadcast %cst_76 : f32 to vector<8x64xf32>
    %310 = arith.addf %309, %308 : vector<8x64xf32>
    %311 = arith.divf %309, %310 : vector<8x64xf32>
    %312 = vector.extract_strided_slice %301 {offsets = [0, 0], sizes = [8, 64], strides = [1, 1]} : vector<8x96xf32> to vector<8x64xf32>
    %313 = vector.extract_strided_slice %303 {offsets = [0, 0], sizes = [8, 64], strides = [1, 1]} : vector<8x96xf32> to vector<8x64xf32>
    %314 = arith.addf %312, %313 : vector<8x64xf32>
    %315 = arith.negf %314 : vector<8x64xf32>
    %316 = math.exp %315 : vector<8x64xf32>
    %cst_77 = arith.constant 1.000000e+00 : f32
    %317 = vector.broadcast %cst_77 : f32 to vector<8x64xf32>
    %318 = arith.addf %317, %316 : vector<8x64xf32>
    %319 = arith.divf %317, %318 : vector<8x64xf32>
    %320 = vector.extract_strided_slice %300 {offsets = [0, 64], sizes = [8, 32], strides = [1, 1]} : vector<8x96xf32> to vector<8x32xf32>
    %321 = vector.extract_strided_slice %311 {offsets = [0, 0], sizes = [8, 32], strides = [1, 1]} : vector<8x64xf32> to vector<8x32xf32>
    %322 = vector.extract_strided_slice %302 {offsets = [0, 64], sizes = [8, 32], strides = [1, 1]} : vector<8x96xf32> to vector<8x32xf32>
    %323 = arith.addf %322, %11 : vector<8x32xf32>
    %324 = arith.mulf %321, %323 : vector<8x32xf32>
    %325 = arith.addf %320, %324 : vector<8x32xf32>
    %326 = math.tanh %325 : vector<8x32xf32>
    %327 = vector.extract_strided_slice %301 {offsets = [0, 64], sizes = [8, 32], strides = [1, 1]} : vector<8x96xf32> to vector<8x32xf32>
    %328 = vector.extract_strided_slice %319 {offsets = [0, 0], sizes = [8, 32], strides = [1, 1]} : vector<8x64xf32> to vector<8x32xf32>
    %329 = vector.extract_strided_slice %303 {offsets = [0, 64], sizes = [8, 32], strides = [1, 1]} : vector<8x96xf32> to vector<8x32xf32>
    %330 = arith.addf %329, %14 : vector<8x32xf32>
    %331 = arith.mulf %328, %330 : vector<8x32xf32>
    %332 = arith.addf %327, %331 : vector<8x32xf32>
    %333 = math.tanh %332 : vector<8x32xf32>
    %334 = vector.extract_strided_slice %311 {offsets = [0, 32], sizes = [8, 32], strides = [1, 1]} : vector<8x64xf32> to vector<8x32xf32>
    %335 = vector.extract_strided_slice %319 {offsets = [0, 32], sizes = [8, 32], strides = [1, 1]} : vector<8x64xf32> to vector<8x32xf32>
    %cst_78 = arith.constant 1.000000e+00 : f32
    %336 = vector.broadcast %cst_78 : f32 to vector<8x32xf32>
    %337 = arith.subf %336, %334 : vector<8x32xf32>
    %338 = arith.mulf %337, %326 : vector<8x32xf32>
    %339 = arith.mulf %334, %285 : vector<8x32xf32>
    %340 = arith.addf %338, %339 : vector<8x32xf32>
    %cst_79 = arith.constant 1.000000e+00 : f32
    %341 = vector.broadcast %cst_79 : f32 to vector<8x32xf32>
    %342 = arith.subf %341, %335 : vector<8x32xf32>
    %343 = arith.mulf %342, %333 : vector<8x32xf32>
    %344 = arith.mulf %335, %290 : vector<8x32xf32>
    %345 = arith.addf %343, %344 : vector<8x32xf32>
    %c6_i32 = arith.constant 6 : i32
    %c8_i32_80 = arith.constant 8 : i32
    %346 = arith.muli %c6_i32, %c8_i32_80 : i32
    %347 = tpu.assume_multiple %346, 8 : i32
    %c7_i32_81 = arith.constant 7 : i32
    %348 = arith.subi %c7_i32_81, %c6_i32 : i32
    %c8_i32_82 = arith.constant 8 : i32
    %349 = arith.muli %348, %c8_i32_82 : i32
    %350 = tpu.assume_multiple %349, 8 : i32
    %351 = arith.index_cast %347 : i32 to index
    %c0_83 = arith.constant 0 : index
    %352 = vector.load %arg14[%351, %c0_83] : memref<64x192xf32, #tpu.memory_space<vmem>>, vector<8x192xf32>
    %353 = arith.index_cast %350 : i32 to index
    %c0_84 = arith.constant 0 : index
    %354 = vector.load %arg14[%353, %c0_84] : memref<64x192xf32, #tpu.memory_space<vmem>>, vector<8x192xf32>
    %355 = vector.extract_strided_slice %352 {offsets = [0, 0], sizes = [8, 96], strides = [1, 1]} : vector<8x192xf32> to vector<8x96xf32>
    %356 = vector.extract_strided_slice %354 {offsets = [0, 96], sizes = [8, 96], strides = [1, 1]} : vector<8x192xf32> to vector<8x96xf32>
    %cst_85 = arith.constant dense<0.000000e+00> : vector<8x96xf32>
    %357 = tpu.matmul %340, %7, %cst_85 {dimension_numbers = #tpu.dot_dimension_numbers<[1], [0], [0], [1], [0, 0, 1, 1], [], []>} : vector<8x32xf32>, vector<32x96xf32>, vector<8x96xf32> -> vector<8x96xf32>
    %cst_86 = arith.constant dense<0.000000e+00> : vector<8x96xf32>
    %358 = tpu.matmul %345, %8, %cst_86 {dimension_numbers = #tpu.dot_dimension_numbers<[1], [0], [0], [1], [0, 0, 1, 1], [], []>} : vector<8x32xf32>, vector<32x96xf32>, vector<8x96xf32> -> vector<8x96xf32>
    %359 = vector.extract_strided_slice %355 {offsets = [0, 0], sizes = [8, 64], strides = [1, 1]} : vector<8x96xf32> to vector<8x64xf32>
    %360 = vector.extract_strided_slice %357 {offsets = [0, 0], sizes = [8, 64], strides = [1, 1]} : vector<8x96xf32> to vector<8x64xf32>
    %361 = arith.addf %359, %360 : vector<8x64xf32>
    %362 = arith.negf %361 : vector<8x64xf32>
    %363 = math.exp %362 : vector<8x64xf32>
    %cst_87 = arith.constant 1.000000e+00 : f32
    %364 = vector.broadcast %cst_87 : f32 to vector<8x64xf32>
    %365 = arith.addf %364, %363 : vector<8x64xf32>
    %366 = arith.divf %364, %365 : vector<8x64xf32>
    %367 = vector.extract_strided_slice %356 {offsets = [0, 0], sizes = [8, 64], strides = [1, 1]} : vector<8x96xf32> to vector<8x64xf32>
    %368 = vector.extract_strided_slice %358 {offsets = [0, 0], sizes = [8, 64], strides = [1, 1]} : vector<8x96xf32> to vector<8x64xf32>
    %369 = arith.addf %367, %368 : vector<8x64xf32>
    %370 = arith.negf %369 : vector<8x64xf32>
    %371 = math.exp %370 : vector<8x64xf32>
    %cst_88 = arith.constant 1.000000e+00 : f32
    %372 = vector.broadcast %cst_88 : f32 to vector<8x64xf32>
    %373 = arith.addf %372, %371 : vector<8x64xf32>
    %374 = arith.divf %372, %373 : vector<8x64xf32>
    %375 = vector.extract_strided_slice %355 {offsets = [0, 64], sizes = [8, 32], strides = [1, 1]} : vector<8x96xf32> to vector<8x32xf32>
    %376 = vector.extract_strided_slice %366 {offsets = [0, 0], sizes = [8, 32], strides = [1, 1]} : vector<8x64xf32> to vector<8x32xf32>
    %377 = vector.extract_strided_slice %357 {offsets = [0, 64], sizes = [8, 32], strides = [1, 1]} : vector<8x96xf32> to vector<8x32xf32>
    %378 = arith.addf %377, %11 : vector<8x32xf32>
    %379 = arith.mulf %376, %378 : vector<8x32xf32>
    %380 = arith.addf %375, %379 : vector<8x32xf32>
    %381 = math.tanh %380 : vector<8x32xf32>
    %382 = vector.extract_strided_slice %356 {offsets = [0, 64], sizes = [8, 32], strides = [1, 1]} : vector<8x96xf32> to vector<8x32xf32>
    %383 = vector.extract_strided_slice %374 {offsets = [0, 0], sizes = [8, 32], strides = [1, 1]} : vector<8x64xf32> to vector<8x32xf32>
    %384 = vector.extract_strided_slice %358 {offsets = [0, 64], sizes = [8, 32], strides = [1, 1]} : vector<8x96xf32> to vector<8x32xf32>
    %385 = arith.addf %384, %14 : vector<8x32xf32>
    %386 = arith.mulf %383, %385 : vector<8x32xf32>
    %387 = arith.addf %382, %386 : vector<8x32xf32>
    %388 = math.tanh %387 : vector<8x32xf32>
    %389 = vector.extract_strided_slice %366 {offsets = [0, 32], sizes = [8, 32], strides = [1, 1]} : vector<8x64xf32> to vector<8x32xf32>
    %390 = vector.extract_strided_slice %374 {offsets = [0, 32], sizes = [8, 32], strides = [1, 1]} : vector<8x64xf32> to vector<8x32xf32>
    %cst_89 = arith.constant 1.000000e+00 : f32
    %391 = vector.broadcast %cst_89 : f32 to vector<8x32xf32>
    %392 = arith.subf %391, %389 : vector<8x32xf32>
    %393 = arith.mulf %392, %381 : vector<8x32xf32>
    %394 = arith.mulf %389, %340 : vector<8x32xf32>
    %395 = arith.addf %393, %394 : vector<8x32xf32>
    %cst_90 = arith.constant 1.000000e+00 : f32
    %396 = vector.broadcast %cst_90 : f32 to vector<8x32xf32>
    %397 = arith.subf %396, %390 : vector<8x32xf32>
    %398 = arith.mulf %397, %388 : vector<8x32xf32>
    %399 = arith.mulf %390, %345 : vector<8x32xf32>
    %400 = arith.addf %398, %399 : vector<8x32xf32>
    %c7_i32_91 = arith.constant 7 : i32
    %c8_i32_92 = arith.constant 8 : i32
    %401 = arith.muli %c7_i32_91, %c8_i32_92 : i32
    %402 = tpu.assume_multiple %401, 8 : i32
    %c7_i32_93 = arith.constant 7 : i32
    %403 = arith.subi %c7_i32_93, %c7_i32_91 : i32
    %c8_i32_94 = arith.constant 8 : i32
    %404 = arith.muli %403, %c8_i32_94 : i32
    %405 = tpu.assume_multiple %404, 8 : i32
    %406 = arith.index_cast %402 : i32 to index
    %c0_95 = arith.constant 0 : index
    %407 = vector.load %arg14[%406, %c0_95] : memref<64x192xf32, #tpu.memory_space<vmem>>, vector<8x192xf32>
    %408 = arith.index_cast %405 : i32 to index
    %c0_96 = arith.constant 0 : index
    %409 = vector.load %arg14[%408, %c0_96] : memref<64x192xf32, #tpu.memory_space<vmem>>, vector<8x192xf32>
    %410 = vector.extract_strided_slice %407 {offsets = [0, 0], sizes = [8, 96], strides = [1, 1]} : vector<8x192xf32> to vector<8x96xf32>
    %411 = vector.extract_strided_slice %409 {offsets = [0, 96], sizes = [8, 96], strides = [1, 1]} : vector<8x192xf32> to vector<8x96xf32>
    %cst_97 = arith.constant dense<0.000000e+00> : vector<8x96xf32>
    %412 = tpu.matmul %395, %7, %cst_97 {dimension_numbers = #tpu.dot_dimension_numbers<[1], [0], [0], [1], [0, 0, 1, 1], [], []>} : vector<8x32xf32>, vector<32x96xf32>, vector<8x96xf32> -> vector<8x96xf32>
    %cst_98 = arith.constant dense<0.000000e+00> : vector<8x96xf32>
    %413 = tpu.matmul %400, %8, %cst_98 {dimension_numbers = #tpu.dot_dimension_numbers<[1], [0], [0], [1], [0, 0, 1, 1], [], []>} : vector<8x32xf32>, vector<32x96xf32>, vector<8x96xf32> -> vector<8x96xf32>
    %414 = vector.extract_strided_slice %410 {offsets = [0, 0], sizes = [8, 64], strides = [1, 1]} : vector<8x96xf32> to vector<8x64xf32>
    %415 = vector.extract_strided_slice %412 {offsets = [0, 0], sizes = [8, 64], strides = [1, 1]} : vector<8x96xf32> to vector<8x64xf32>
    %416 = arith.addf %414, %415 : vector<8x64xf32>
    %417 = arith.negf %416 : vector<8x64xf32>
    %418 = math.exp %417 : vector<8x64xf32>
    %cst_99 = arith.constant 1.000000e+00 : f32
    %419 = vector.broadcast %cst_99 : f32 to vector<8x64xf32>
    %420 = arith.addf %419, %418 : vector<8x64xf32>
    %421 = arith.divf %419, %420 : vector<8x64xf32>
    %422 = vector.extract_strided_slice %411 {offsets = [0, 0], sizes = [8, 64], strides = [1, 1]} : vector<8x96xf32> to vector<8x64xf32>
    %423 = vector.extract_strided_slice %413 {offsets = [0, 0], sizes = [8, 64], strides = [1, 1]} : vector<8x96xf32> to vector<8x64xf32>
    %424 = arith.addf %422, %423 : vector<8x64xf32>
    %425 = arith.negf %424 : vector<8x64xf32>
    %426 = math.exp %425 : vector<8x64xf32>
    %cst_100 = arith.constant 1.000000e+00 : f32
    %427 = vector.broadcast %cst_100 : f32 to vector<8x64xf32>
    %428 = arith.addf %427, %426 : vector<8x64xf32>
    %429 = arith.divf %427, %428 : vector<8x64xf32>
    %430 = vector.extract_strided_slice %410 {offsets = [0, 64], sizes = [8, 32], strides = [1, 1]} : vector<8x96xf32> to vector<8x32xf32>
    %431 = vector.extract_strided_slice %421 {offsets = [0, 0], sizes = [8, 32], strides = [1, 1]} : vector<8x64xf32> to vector<8x32xf32>
    %432 = vector.extract_strided_slice %412 {offsets = [0, 64], sizes = [8, 32], strides = [1, 1]} : vector<8x96xf32> to vector<8x32xf32>
    %433 = arith.addf %432, %11 : vector<8x32xf32>
    %434 = arith.mulf %431, %433 : vector<8x32xf32>
    %435 = arith.addf %430, %434 : vector<8x32xf32>
    %436 = math.tanh %435 : vector<8x32xf32>
    %437 = vector.extract_strided_slice %411 {offsets = [0, 64], sizes = [8, 32], strides = [1, 1]} : vector<8x96xf32> to vector<8x32xf32>
    %438 = vector.extract_strided_slice %429 {offsets = [0, 0], sizes = [8, 32], strides = [1, 1]} : vector<8x64xf32> to vector<8x32xf32>
    %439 = vector.extract_strided_slice %413 {offsets = [0, 64], sizes = [8, 32], strides = [1, 1]} : vector<8x96xf32> to vector<8x32xf32>
    %440 = arith.addf %439, %14 : vector<8x32xf32>
    %441 = arith.mulf %438, %440 : vector<8x32xf32>
    %442 = arith.addf %437, %441 : vector<8x32xf32>
    %443 = math.tanh %442 : vector<8x32xf32>
    %444 = vector.extract_strided_slice %421 {offsets = [0, 32], sizes = [8, 32], strides = [1, 1]} : vector<8x64xf32> to vector<8x32xf32>
    %445 = vector.extract_strided_slice %429 {offsets = [0, 32], sizes = [8, 32], strides = [1, 1]} : vector<8x64xf32> to vector<8x32xf32>
    %cst_101 = arith.constant 1.000000e+00 : f32
    %446 = vector.broadcast %cst_101 : f32 to vector<8x32xf32>
    %447 = arith.subf %446, %444 : vector<8x32xf32>
    %448 = arith.mulf %447, %436 : vector<8x32xf32>
    %449 = arith.mulf %444, %395 : vector<8x32xf32>
    %450 = arith.addf %448, %449 : vector<8x32xf32>
    %cst_102 = arith.constant 1.000000e+00 : f32
    %451 = vector.broadcast %cst_102 : f32 to vector<8x32xf32>
    %452 = arith.subf %451, %445 : vector<8x32xf32>
    %453 = arith.mulf %452, %443 : vector<8x32xf32>
    %454 = arith.mulf %445, %400 : vector<8x32xf32>
    %455 = arith.addf %453, %454 : vector<8x32xf32>
    %c8_i32_103 = arith.constant 8 : i32
    %456 = tpu.concatenate %450, %455 in 0 : vector<8x32xf32>, vector<8x32xf32> -> vector<16x32xf32>
    %457 = tpu.iota {dimensions = array<i32: 0>} : vector<16x16xi32>
    %458 = tpu.iota {dimensions = array<i32: 1>} : vector<16x16xi32>
    %c8_i32_104 = arith.constant 8 : i32
    %459 = vector.broadcast %c8_i32_104 : i32 to vector<16x16xi32>
    %460 = arith.cmpi slt, %457, %459 : vector<16x16xi32>
    %c8_i32_105 = arith.constant 8 : i32
    %461 = vector.broadcast %c8_i32_105 : i32 to vector<16x16xi32>
    %462 = arith.subi %457, %461 : vector<16x16xi32>
    %463 = arith.select %460, %457, %462 : vector<16x16xi1>, vector<16x16xi32>
    %c8_i32_106 = arith.constant 8 : i32
    %464 = vector.broadcast %c8_i32_106 : i32 to vector<16x16xi32>
    %465 = arith.cmpi slt, %457, %464 : vector<16x16xi32>
    %c2_i32_107 = arith.constant 2 : i32
    %466 = vector.broadcast %c2_i32_107 : i32 to vector<16x16xi32>
    %467 = arith.muli %466, %463 : vector<16x16xi32>
    %c2_i32_108 = arith.constant 2 : i32
    %468 = vector.broadcast %c2_i32_108 : i32 to vector<16x16xi32>
    %469 = arith.muli %468, %463 : vector<16x16xi32>
    %c1_i32_109 = arith.constant 1 : i32
    %470 = vector.broadcast %c1_i32_109 : i32 to vector<16x16xi32>
    %471 = arith.addi %469, %470 : vector<16x16xi32>
    %472 = arith.select %465, %467, %471 : vector<16x16xi1>, vector<16x16xi32>
    %c2_i32_110 = arith.constant 2 : i32
    %473 = vector.broadcast %c2_i32_110 : i32 to vector<16x16xi32>
    %474 = arith.cmpi slt, %472, %473 : vector<16x16xi32>
    %c2_i32_111 = arith.constant 2 : i32
    %475 = vector.broadcast %c2_i32_111 : i32 to vector<16x16xi32>
    %476 = arith.subi %472, %475 : vector<16x16xi32>
    %c8_i32_112 = arith.constant 8 : i32
    %477 = vector.broadcast %c8_i32_112 : i32 to vector<16x16xi32>
    %478 = arith.addi %476, %477 : vector<16x16xi32>
    %479 = arith.select %474, %472, %478 : vector<16x16xi1>, vector<16x16xi32>
    %480 = arith.cmpi eq, %458, %479 : vector<16x16xi32>
    %c2_i32_113 = arith.constant 2 : i32
    %481 = vector.broadcast %c2_i32_113 : i32 to vector<16x16xi32>
    %482 = arith.cmpi slt, %463, %481 : vector<16x16xi32>
    %483 = arith.andi %480, %482 : vector<16x16xi1>
    %cst_114 = arith.constant 1.000000e+00 : f32
    %cst_115 = arith.constant 0.000000e+00 : f32
    %484 = vector.broadcast %cst_114 : f32 to vector<16x16xf32>
    %485 = vector.broadcast %cst_115 : f32 to vector<16x16xf32>
    %486 = arith.select %483, %484, %485 : vector<16x16xi1>, vector<16x16xf32>
    %cst_116 = arith.constant dense<0.000000e+00> : vector<16x32xf32>
    %487 = tpu.matmul %486, %456, %cst_116 {dimension_numbers = #tpu.dot_dimension_numbers<[1], [0], [0], [1], [0, 0, 1, 1], [], []>} : vector<16x16xf32>, vector<16x32xf32>, vector<16x32xf32> -> vector<16x32xf32>
    %488 = vector.extract_strided_slice %487 {offsets = [0, 0], sizes = [8, 32], strides = [1, 1]} : vector<16x32xf32> to vector<8x32xf32>
    %489 = vector.extract_strided_slice %487 {offsets = [8, 0], sizes = [8, 32], strides = [1, 1]} : vector<16x32xf32> to vector<8x32xf32>
    %490 = tpu.concatenate %488, %489 in 1 : vector<8x32xf32>, vector<8x32xf32> -> vector<8x64xf32>
    %c0_117 = arith.constant 0 : index
    %c0_118 = arith.constant 0 : index
    %491 = vector.load %arg7[%c0_117, %c0_118] : memref<64x64xf32, #tpu.memory_space<vmem>>, vector<64x64xf32>
    %cst_119 = arith.constant dense<0.000000e+00> : vector<8x64xf32>
    %492 = tpu.matmul %490, %491, %cst_119 {dimension_numbers = #tpu.dot_dimension_numbers<[1], [0], [0], [1], [0, 0, 1, 1], [], []>} : vector<8x64xf32>, vector<64x64xf32>, vector<8x64xf32> -> vector<8x64xf32>
    %c0_120 = arith.constant 0 : index
    %c0_121 = arith.constant 0 : index
    %493 = vector.load %arg8[%c0_120, %c0_121] : memref<1x64xf32, #tpu.memory_space<vmem>>, vector<1x64xf32>
    %494 = vector.broadcast %493 : vector<1x64xf32> to vector<8x64xf32>
    %495 = arith.addf %492, %494 : vector<8x64xf32>
    %cst_122 = arith.constant 0.000000e+00 : f32
    %496 = vector.broadcast %cst_122 : f32 to vector<8x64xf32>
    %497 = arith.maximumf %495, %496 : vector<8x64xf32>
    %c0_123 = arith.constant 0 : index
    %c0_124 = arith.constant 0 : index
    %498 = vector.load %arg9[%c0_123, %c0_124] : memref<64x64xf32, #tpu.memory_space<vmem>>, vector<64x64xf32>
    %cst_125 = arith.constant dense<0.000000e+00> : vector<8x64xf32>
    %499 = tpu.matmul %497, %498, %cst_125 {dimension_numbers = #tpu.dot_dimension_numbers<[1], [0], [0], [1], [0, 0, 1, 1], [], []>} : vector<8x64xf32>, vector<64x64xf32>, vector<8x64xf32> -> vector<8x64xf32>
    %c0_126 = arith.constant 0 : index
    %c0_127 = arith.constant 0 : index
    %500 = vector.load %arg10[%c0_126, %c0_127] : memref<1x64xf32, #tpu.memory_space<vmem>>, vector<1x64xf32>
    %501 = vector.broadcast %500 : vector<1x64xf32> to vector<8x64xf32>
    %502 = arith.addf %499, %501 : vector<8x64xf32>
    %cst_128 = arith.constant 0.000000e+00 : f32
    %503 = vector.broadcast %cst_128 : f32 to vector<8x64xf32>
    %504 = arith.maximumf %502, %503 : vector<8x64xf32>
    %c0_129 = arith.constant 0 : index
    %c0_130 = arith.constant 0 : index
    %505 = vector.load %arg11[%c0_129, %c0_130] : memref<1x64xf32, #tpu.memory_space<vmem>>, vector<1x64xf32>
    %506 = vector.broadcast %505 : vector<1x64xf32> to vector<8x64xf32>
    %507 = arith.mulf %504, %506 : vector<8x64xf32>
    %cst_131 = arith.constant dense<0.000000e+00> : vector<8xf32>
    %508 = vector.multi_reduction <add>, %507, %cst_131 [1] : vector<8x64xf32> to vector<8xf32>
    %509 = vector.shape_cast %508 : vector<8xf32> to vector<8x1xf32>
    %c0_132 = arith.constant 0 : index
    %c0_133 = arith.constant 0 : index
    %510 = vector.load %arg12[%c0_132, %c0_133] : memref<1x1xf32, #tpu.memory_space<vmem>>, vector<1x1xf32>
    %511 = vector.broadcast %510 : vector<1x1xf32> to vector<8x1xf32>
    %512 = arith.addf %509, %511 : vector<8x1xf32>
    %513 = arith.negf %512 : vector<8x1xf32>
    %514 = math.exp %513 : vector<8x1xf32>
    %cst_134 = arith.constant 1.000000e+00 : f32
    %515 = vector.broadcast %cst_134 : f32 to vector<8x1xf32>
    %516 = arith.addf %515, %514 : vector<8x1xf32>
    %517 = arith.divf %515, %516 : vector<8x1xf32>
    %518 = vector.shape_cast %517 : vector<8x1xf32> to vector<8x1xf32>
    %519 = vector.broadcast %518 : vector<8x1xf32> to vector<8x128xf32>
    %c0_135 = arith.constant 0 : index
    %c0_136 = arith.constant 0 : index
    %520 = vector.load %arg13[%c0_135, %c0_136] : memref<8x128xf32, #tpu.memory_space<vmem>>, vector<8x128xf32>
    tpu.vector_store %arg13[%c0_135, %c0_136], %519 {strides = array<i32>} : memref<8x128xf32, #tpu.memory_space<vmem>>, vector<8x128xf32>,
    return
  }
}

</mosaic_0001>

<bundles_post_ra>
// kernel: discriminator_forward.1
= control target key start
LH: loop header
LB: loop body
LE: loop exit
PB: predicated region body
PF: predicated region fallthrough
CT: control target
= control target key end

     0   :  { %s3661_s0 = inlined_call_operand.vmem [shape: bf16[64,32], index: 0, kind: input, shape index: {}]   ;;  %s3662_s1 = inlined_call_operand.vmem [shape: bf16[32,192], index: 1, kind: input, shape index: {}]   ;;  %s3663_s2 = inlined_call_operand.vmem [shape: f32[1,192], index: 2, kind: input, shape index: {}]   ;;  %s3664_s3 = inlined_call_operand.hbm [shape: f32[32,96], index: 3, kind: input, shape index: {}]   ;;  %s3665_s4 = inlined_call_operand.hbm [shape: f32[32,96], index: 4, kind: input, shape index: {}]   ;;  %s3666_s5 = inlined_call_operand.vmem [shape: f32[1,32], index: 5, kind: input, shape index: {}]   ;;  %s3667_s6 = inlined_call_operand.vmem [shape: f32[1,32], index: 6, kind: input, shape index: {}]   ;;  %s3668_s7 = inlined_call_operand.vmem [shape: f32[64,64], index: 7, kind: input, shape index: {}]   ;;  %s3669_s8 = inlined_call_operand.vmem [shape: f32[1,64], index: 8, kind: input, shape index: {}]   ;;  %s3670_s9 = inlined_call_operand.hbm [shape: f32[64,64], index: 9, kind: input, shape index: {}]   ;;  %s3671_s10 = inlined_call_operand.vmem [shape: f32[1,64], index: 10, kind: input, shape index: {}]   ;;  %s3672_s11 = inlined_call_operand.vmem [shape: f32[1,64], index: 11, kind: input, shape index: {}]   ;;  %s3673_s12 = inlined_call_operand.<no memory space> [shape: f32[1,1], index: 12, kind: input, shape index: {}]   ;;  %s3674_s13 = inlined_call_operand.vmem [shape: f32[8,128], index: 13, kind: output, shape index: {}]  }
   0x1   :  { %v18_v0 = vstv %s3673_s12 }
   0x2   :  { %19 = vst [vmem:[#allocation3] sm:$0x1] %v18_v0 }
   0x3   :  { %20 = vsyncpa [#allocation5], 0 }
   0x4   :  { %21 = vsyncpa [#allocation7], 0  ;;  %s3115_s27 = smov [#allocation6]   ;;  %s3116_s29 = smov [#allocation4]  }
   0x5   :  { %s45_s28 = sshll.u32 %s3115_s27, 4  ;;  %s33_s30 = sshll.u32 %s3116_s29, 4  ;;  %s46_s28 = int_to_ptr.vmem [resolvable:$true] %s45_s28  ;;  %s3200_s30 = int_to_ptr.vmem [resolvable:$true] %s33_s30 }
   0x6   :  { %s3045_s16 = scalar_lea.hbm %s3665_s4, 512 }
   0x7   :  { %p3046_p0 = scmp.ne.s32.totalorder %s3665_s4, %s3045_s16  ;;  %p3049_p1 = scmp.lt.u32.totalorder %s3045_s16, %s3665_s4 }
   0x9   :  { %p3051_p2 = pnand %p3049_p1, %p3046_p0 }
   0xb   :  { %3054 = shalt.err (!%p3051_p2)
}
   0xc   :  { %s3055_s20 = scalar_lea.vmem %s46_s28, 512  ;;  %p3060_p4 = scmp.lt.s32.totalorder %s46_s28, %s46_s28 }
   0xd   :  { %p3056_p3 = scmp.ne.s32.totalorder %s46_s28, %s3055_s20  ;;  %p3061_p5 = scmp.lt.s32.totalorder %s3055_s20, %s3055_s20 }
   0xf   :  { %p3062_p6 = por %p3061_p5, %p3060_p4 }
  0x11   :  { %p3063_p7 = pnand %p3062_p6, %p3056_p3 }
  0x13   :  { %3066 = shalt.err (!%p3063_p7)
}
  0x14   :  { %s3117_s21 = smov 128   ;;  %s3118_s22 = smov 8  }
  0x15   :  { %51 = dma.hbm_to_vmem [thread:$0]  %s3665_s4, 512, %s46_s28, [#allocation7], %s3117_s21, %s3117_s21, %s3118_s22  }
  0x16   :  { %s3067_s27 = scalar_lea.hbm %s3664_s3, 512 }
  0x17   :  { %p3068_p8 = scmp.ne.s32.totalorder %s3664_s3, %s3067_s27  ;;  %p3071_p9 = scmp.lt.u32.totalorder %s3067_s27, %s3664_s3 }
  0x19   :  { %p3073_p10 = pnand %p3071_p9, %p3068_p8 }
  0x1b   :  { %3076 = shalt.err (!%p3073_p10)
}
  0x1c   :  { %s3077_s17 = scalar_lea.vmem %s3200_s30, 512  ;;  %p3082_p12 = scmp.lt.s32.totalorder %s3200_s30, %s3200_s30 }
  0x1d   :  { %p3078_p11 = scmp.ne.s32.totalorder %s3200_s30, %s3077_s17  ;;  %p3083_p13 = scmp.lt.s32.totalorder %s3077_s17, %s3077_s17 }
  0x1f   :  { %p3084_p0 = por %p3083_p13, %p3082_p12 }
  0x21   :  { %p3085_p1 = pnand %p3084_p0, %p3078_p11 }
  0x23   :  { %3088 = shalt.err (!%p3085_p1)
}
  0x24   :  { %39 = dma.hbm_to_vmem [thread:$0]  %s3664_s3, 512, %s3200_s30, [#allocation5], %s3117_s21, %s3117_s21, %s3118_s22  }
  0x25   :  { %s3119_s18 = smov [#allocation8]   ;;  %s3089_s23 = scalar_lea.hbm %s3670_s9, 1024 }
  0x26   :  { %s65_s19 = sshll.u32 %s3119_s18, 4  ;;  %p3090_p2 = scmp.ne.s32.totalorder %s3670_s9, %s3089_s23  ;;  %s66_s19 = int_to_ptr.vmem [resolvable:$true] %s65_s19 }
  0x27   :  { %p3093_p3 = scmp.lt.u32.totalorder %s3089_s23, %s3670_s9 }
  0x29   :  { %p3095_p4 = pnand %p3093_p3, %p3090_p2 }
  0x2b   :  { %3098 = shalt.err (!%p3095_p4)
}
  0x2c   :  { %s3099_s29 = scalar_lea.vmem %s66_s19, 1024  ;;  %p3104_p6 = scmp.lt.s32.totalorder %s66_s19, %s66_s19 }
  0x2d   :  { %p3100_p5 = scmp.ne.s32.totalorder %s66_s19, %s3099_s29  ;;  %p3105_p7 = scmp.lt.s32.totalorder %s3099_s29, %s3099_s29 }
  0x2f   :  { %p3106_p8 = por %p3105_p7, %p3104_p6 }
  0x31   :  { %p3107_p9 = pnand %p3106_p8, %p3100_p5 }
  0x33   :  { %3110 = shalt.err (!%p3107_p9)
}
  0x34   :  { %71 = dma.hbm_to_vmem [thread:$0]  %s3670_s9, 1024, %s66_s19, [#allocation7], %s3117_s21, %s3117_s21, %s3118_s22  }
  0x35   :  { %3111 = dma.done.wait [#allocation5], 512  }
  0x36   :  { %3112 = vsyncadd [#allocation5], 4294966784 }
  0x37   :  { %3113 = dma.done.wait [#allocation7], 1536  }
  0x38   :  { %3114 = vsyncadd [#allocation7], 4294965760  ;;  %v3120_v1 = vmov 0.0|0.0   ;;  %vm3121_vm0 = vmmov 0   ;;  %v3122_v2 = vmov 0.0   ;;  %v3123_v3 = vmov 0  }
  0x39   :  { %2758 = vmatprep.subr.bf16.mxu1 %v3120_v1  ;;  %2545 = vmatprep.mubr.msk.f32.mxu1 %vm3121_vm0, %v3122_v2  ;;  %v2901_v4 = vld [vmem:[%s3662_s1 + $0x4] ss:$8 sps:$4 sm:$0xff]   ;;  %v2903_v7 = vld [vmem:[%s3662_s1] ss:$8 sps:$4 sm:$0xff]   ;;  %v2904_v9 = vld [vmem:[%s3662_s1 + $0x14] ss:$8 sps:$4 sm:$0xff]   ;;  %v102_v25 = vlaneseq }
  0x3a   :  { %197 = vmatprep.mubr.bf16.mxu0 %v3123_v3  ;;  %2899 = vset.pattern.permute.xlu1 %v3123_v3  ;;  %v255_v5 = vld [vmem:[#allocation4] sm:$0xff]  ;;  %v256_v6 = vld [vmem:[#allocation4 + $0x8] sm:$0xff]  ;;  %v257_v10 = vld [vmem:[#allocation4 + $0x10] sm:$0xff]  ;;  %s3124_s20 = smov 64   ;;  %vm152_vm1 = vcmask 261120   ;;  %vm239_vm2 = vcmask 523264  }
  0x3b   :  { %2900 = vset.pattern.permute.xlu0 %v3123_v3  ;;  %165 = vmatprep.subr.bf16.mxu0 %v2901_v4  ;;  %v3261_v8 = vpack.c.bf16 %v256_v6, %v255_v5  ;;  %v258_v11 = vld [vmem:[#allocation4 + $0x18] sm:$0xff]  ;;  %v259_v16 = vld [vmem:[#allocation6] sm:$0xff]  ;;  %v260_v17 = vld [vmem:[#allocation6 + $0x8] sm:$0xff]  ;;  %v3321_v26 = vshrl.u32 %v102_v25, 7  ;;  %s3125_s3 = smov 96   ;;  %vm2062_vm7 = vcmask 130048  }
  0x3c   :  { %166 = vmatpush1.bf16.msra.mxu0 %v2903_v7  ;;  %v2906_v12 = vld [vmem:[%s3662_s1 + $0x10] ss:$8 sps:$4 sm:$0xff]   ;;  %v3270_v13 = vpack.c.bf16 %v258_v11, %v257_v10  ;;  %v2907_v14 = vld [vmem:[%s3661_s0] sm:$0xff]   ;;  %v3291_v18 = vpack.c.bf16 %v260_v17, %v259_v16  ;;  %v2908_v22 = vld [vmem:[%s3661_s0 + $0x8] sm:$0xff]  }
  0x3d   :  { %2760 = vmatpush3.bf16.msra.mxu1 %v3261_v8  ;;  %167 = vmatprep.subr.bf16.mxu0 %v2904_v9  ;;  %v2383_v15 = vld [vmem:[%s3666_s5] ss:$0 sm:$0xff]  ;;  %v261_v19 = vld [vmem:[#allocation6 + $0x10] sm:$0xff]  ;;  %v104_v27 = vsub.s32 0, %v3321_v26  ;;  %v108_v29 = vsub.s32 1, %v3321_v26  ;;  %vm2049_vm6 = vcmp.lt.s32.totalorder %v3321_v26, 2 }
  0x3e   :  { %2761 = vmatprep.subr.bf16.mxu1 %v3120_v1  ;;  %453 = vrot.lane.b32.xlu0 %v2383_v15, %s3124_s20  ;;  %v262_v20 = vld [vmem:[#allocation6 + $0x18] sm:$0xff]  ;;  %v2909_v23 = vld [vmem:[%s3661_s0 + $0x10] sm:$0xff]  }
  0x3f   :  { %v3294_v21 = vpack.c.bf16 %v262_v20, %v261_v19  ;;  %v2910_v24 = vld [vmem:[%s3661_s0 + $0x18] sm:$0xff]   ;;  %v100_v28 = vld [vmem:[%s3663_s2] sm:$0x3] }
  0x40   :  { %168 = vmatpush1.bf16.msra.mxu0 %v2906_v12  ;;  %v105_v30 = vrot.slane %v100_v28, %v104_v27  ;;  %v3328_v31 = vrot.slane %v100_v28, %v108_v29  ;;  %v2384_v53 = vld [vmem:[%s3667_s6] ss:$0 sm:$0xff]  ;;  %s3126_s6 = smov 32  }
  0x41   :  { %2763 = vmatpush3.bf16.msra.mxu1 %v3270_v13  ;;  %2782 = vmatprep.subr.bf16.mxu0 %v3120_v1 }
  0x42   :  { %2764 = vmatprep.subr.bf16.mxu1 %v3120_v1 }
  0x43   :  { %2379 = vmatmul.mubr.msk.bf16.vlgmr.msra.gmra.mrb[0].mxu0 %vm152_vm1, %v2907_v14 }
  0x44   :  { %2546 = vmatmul.mubr.f32.vlgmr.msra.gmra.mrb[0].mxu1 %v3122_v2  ;;  %207 = vmatprep.mubr.bf16.mxu0 %v3123_v3 }
  0x45   :  { %2556 = vmatprep.mubr.msk.f32.mxu1 %vm3121_vm0, %v3122_v2  ;;  %2784 = vmatpush3.bf16.msra.mxu0 %v3261_v8 }
  0x46   :  { %2785 = vmatprep.subr.bf16.mxu0 %v3120_v1  ;;  %2766 = vmatpush3.bf16.msra.mxu1 %v3291_v18 }
  0x47   :  { %2767 = vmatprep.subr.bf16.mxu1 %v3120_v1 }
  0x49   :  { %2787 = vmatpush3.bf16.msra.mxu0 %v3270_v13 }
  0x4a   :  { %2794 = vmatprep.subr.bf16.mxu0 %v3120_v1  ;;  %2769 = vmatpush3.bf16.msra.mxu1 %v3294_v21 }
  0x4b   :  { %2380 = vmatmul.mubr.msk.bf16.gmra.mrb[4].mxu0 %vm152_vm1, %v2908_v22  ;;  %2770 = vmatprep.subr.bf16.mxu1 %v3120_v1 }
  0x4c   :  { %217 = vmatprep.mubr.bf16.mxu0 %v3123_v3 }
  0x4d   :  { %2557 = vmatmul.mubr.f32.vlgmr.msra.gmra.mrb[2].mxu1 %v3122_v2 }
  0x4e   :  { %2772 = vmatpush3.bf16.msra.mxu1 %v3261_v8  ;;  %2567 = vmatprep.mubr.msk.f32.mxu1 %vm3121_vm0, %v3122_v2 }
  0x4f   :  { %2773 = vmatprep.subr.bf16.mxu1 %v3120_v1 }
  0x52   :  { %2775 = vmatpush3.bf16.msra.mxu1 %v3270_v13 }
  0x53   :  { %2381 = vmatmul.mubr.msk.bf16.gmra.mrb[8].mxu0 %vm152_vm1, %v2909_v23  ;;  %2776 = vmatprep.subr.bf16.mxu1 %v3120_v1 }
  0x54   :  { %227 = vmatprep.mubr.bf16.mxu0 %v3123_v3 }
  0x5b   :  { %2382 = vmatmul.mubr.msk.bf16.gmra.mrb[12].mxu0 %vm152_vm1, %v2910_v24 }
  0x5c   :  { %2589 = vmatprep.mubr.msk.f32.mxu0 %vm3121_vm0, %v3122_v2 }
  0xb0   :  { %v3330_v32 = vpop.permute.xlu0 %453 }
 0x116   :  { %v199_v33 = vpop.f32.mrb[0].mxu0 }
 0x117   :  { %v354_v34 = vpop.f32.mrb[0].mxu1  ;;  %v200_v35 = vadd.f32 %v199_v33, %v105_v30  ;;  %v201_v36 = vpop.f32.mrb[1].mxu0 }
 0x118   :  { %v456_v37 = vadd.f32 %v3330_v32, %v354_v34  ;;  %v2547_v38 = vpop.f32.mrb[1].mxu1  ;;  %v202_v39 = vadd.f32 %v201_v36, %v3328_v31  ;;  %v203_v40 = vpop.f32.mrb[2].mxu0 }
 0x119   :  { %238 = vst [vmem:[#allocation2] sm:$0xff] %v200_v35  ;;  %v3334_v41 = vadd.f32 %v203_v40, %v105_v30  ;;  %v205_v42 = vpop.f32.mrb[3].mxu0  ;;  %v428_v44 = vadd.f32 %v354_v34, %v200_v35 }
 0x11a   :  { %458 = vrot.lane.b32.xlu0 %v456_v37, %s3124_s20  ;;  %240 = vst.msk [vmem:[#allocation2 + $0x8] sm:$0xff] %vm239_vm2, %v202_v39  ;;  %v206_v43 = vadd.f32 %v205_v42, %v3328_v31 }
 0x11b   :  { %v2385_v45 = vmul.f32 -1.442695, %v428_v44 }
 0x11c   :  { %242 = vst.msk [vmem:[#allocation2 + $0x18] sm:$0xff] %vm239_vm2, %v206_v43 }
 0x11d   :  { %2911 = vpow2.f32 %v2385_v45 }
 0x11e   :  { %v209_v54 = vpop.f32.mrb[4].mxu0 }
 0x11f   :  { %v3345_v55 = vadd.f32 %v209_v54, %v105_v30  ;;  %v211_v56 = vpop.f32.mrb[5].mxu0 }
 0x120   :  { %v424_v46 = vpop.f32.mrb[2].mxu1  ;;  %v212_v57 = vadd.f32 %v211_v56, %v3328_v31  ;;  %v213_v58 = vpop.f32.mrb[6].mxu0 }
 0x121   :  { %v2558_v47 = vpop.f32.mrb[3].mxu1  ;;  %v3348_v59 = vadd.f32 %v213_v58, %v105_v30  ;;  %v215_v60 = vpop.f32.mrb[7].mxu0 }
 0x122   :  { %244 = vst.msk [vmem:[#allocation2 + $0x28] sm:$0xff] %vm239_vm2, %v212_v57  ;;  %v216_v61 = vadd.f32 %v215_v60, %v3328_v31 }
 0x124   :  { %246 = vst.msk [vmem:[#allocation2 + $0x38] sm:$0xff] %vm239_vm2, %v216_v61 }
 0x126   :  { %v219_v62 = vpop.f32.mrb[8].mxu0 }
 0x127   :  { %v2912_v48 = vpop.eup %2911  ;;  %v3353_v63 = vadd.f32 %v219_v62, %v105_v30  ;;  %v221_v0 = vpop.f32.mrb[9].mxu0 }
 0x128   :  { %v432_v49 = vadd.f32 1.0, %v2912_v48  ;;  %v222_v3 = vadd.f32 %v221_v0, %v3328_v31  ;;  %v223_v4 = vpop.f32.mrb[10].mxu0 }
 0x129   :  { %v3357_v5 = vadd.f32 %v223_v4, %v105_v30  ;;  %v225_v6 = vpop.f32.mrb[11].mxu0 }
 0x12a   :  { %2913 = vrcp.f32 %v432_v49  ;;  %248 = vst.msk [vmem:[#allocation2 + $0x48] sm:$0xff] %vm239_vm2, %v222_v3  ;;  %v226_v7 = vadd.f32 %v225_v6, %v3328_v31 }
 0x12c   :  { %250 = vst.msk [vmem:[#allocation2 + $0x58] sm:$0xff] %vm239_vm2, %v226_v7 }
 0x12e   :  { %v229_v9 = vpop.f32.mrb[12].mxu0 }
 0x12f   :  { %v3361_v10 = vadd.f32 %v229_v9, %v105_v30  ;;  %v231_v11 = vpop.f32.mrb[13].mxu0 }
 0x130   :  { %v232_v12 = vadd.f32 %v231_v11, %v3328_v31  ;;  %v233_v14 = vpop.f32.mrb[14].mxu0 }
 0x131   :  { %v234_v15 = vadd.f32 %v233_v14, %v105_v30  ;;  %v235_v19 = vpop.f32.mrb[15].mxu0 }
 0x132   :  { %252 = vst.msk [vmem:[#allocation2 + $0x68] sm:$0xff] %vm239_vm2, %v232_v12  ;;  %v236_v20 = vadd.f32 %v235_v19, %v3328_v31 }
 0x133   :  { %253 = vst [vmem:[#allocation2 + $0x70] sm:$0xff] %v234_v15 }
 0x134   :  { %v2914_v50 = vpop.eup %2913  ;;  %254 = vst.msk [vmem:[#allocation2 + $0x78] sm:$0xff] %vm239_vm2, %v236_v20 }
 0x135   :  { %v483_v31 = vsub.f32 1.0, %v2914_v50 }
 0x13b   :  { %v284_v43 = vld [vmem:[#allocation2 + $0x78] sm:$0xff] }
 0x18c   :  { %v459_v51 = vpop.permute.xlu0 %458 }
 0x18d   :  { %v461_v52 = vmul.f32 %v2914_v50, %v459_v51 }
 0x18f   :  { %463 = vrot.lane.b32.xlu1 %v461_v52, %s3124_s20 }
 0x193   :  { %468 = vrot.lane.b32.xlu1 %v2384_v53, %s3124_s20 }
 0x197   :  { %436 = vrot.lane.b32.xlu1 %v424_v46, %s3125_s3 }
 0x201   :  { %v464_v16 = vpop.permute.xlu1 %463 }
 0x202   :  { %v466_v17 = vadd.f32 %v464_v16, %v200_v35  ;;  %v489_v35 = vmul.f32 0.0, %v2914_v50 }
 0x204   :  { %2915 = vtanh.f32 %v466_v17 }
 0x205   :  { %v3368_v22 = vpop.permute.xlu1 %468 }
 0x206   :  { %v471_v24 = vadd.f32 %v3368_v22, %v424_v46 }
 0x209   :  { %v437_v27 = vpop.permute.xlu1 %436 }
 0x20a   :  { %v439_v28 = vadd.f32 %v437_v27, %v234_v15  ;;  %v440_v47 = vadd.f32 %v437_v27, %v284_v43 }
 0x20c   :  { %v2386_v29 = vmul.f32 -1.442695, %v439_v28  ;;  %v2387_v48 = vmul.f32 -1.442695, %v440_v47 }
 0x20e   :  { %v2916_v23 = vpop.eup %2915  ;;  %2917 = vpow2.f32 %v2386_v29 }
 0x20f   :  { %485 = vrot.lane.b32.xlu0 %v2916_v23, %s3125_s3 }
 0x213   :  { %473 = vrot.lane.b32.xlu0 %v471_v24, %s3126_s6 }
 0x218   :  { %v2918_v30 = vpop.eup %2917 }
 0x219   :  { %v447_v33 = vadd.f32 1.0, %v2918_v30 }
 0x21b   :  { %2919 = vrcp.f32 %v447_v33 }
 0x225   :  { %v2920_v37 = vpop.eup %2919 }
 0x281   :  { %v486_v34 = vpop.permute.xlu0 %485 }
 0x282   :  { %v488_v36 = vmul.f32 %v486_v34, %v483_v31 }
 0x284   :  { %v3373_v38 = vadd.f32 %v489_v35, %v488_v36 }
 0x285   :  { %v474_v39 = vpop.permute.xlu0 %473 }
 0x286   :  { %v476_v40 = vmul.f32 %v2920_v37, %v474_v39  ;;  %510 = vrot.lane.b32.xlu1 %v3373_v38, %s3125_s3  ;;  %v508_v37 = vld [vmem:[#allocation2 + $0x68] sm:$0xff] }
 0x288   :  { %478 = vrot.lane.b32.xlu0 %v476_v40, %s3124_s20 }
 0x2f8   :  { %v511_v42 = vpop.permute.xlu1 %510 }
 0x2f9   :  { %2568 = vmatmul.mubr.msk.f32.vlgmr.msra.gmra.mrb[4].mxu1 %vm152_vm1, %v511_v42 }
 0x2fa   :  { %v479_v44 = vpop.permute.xlu0 %478  ;;  %2778 = vmatpush3.bf16.msra.mxu1 %v3291_v18  ;;  %2578 = vmatprep.mubr.msk.f32.mxu1 %vm3121_vm0, %v3122_v2 }
 0x2fb   :  { %v481_v45 = vadd.f32 %v479_v44, %v284_v43  ;;  %2779 = vmatprep.subr.bf16.mxu1 %v3120_v1 }
 0x2fd   :  { %2921 = vtanh.f32 %v481_v45 }
 0x2fe   :  { %2781 = vmatpush3.bf16.msra.mxu1 %v3294_v21  ;;  %2923 = vpow2.f32 %v2387_v48 }
 0x2ff   :  { %2788 = vmatprep.subr.bf16.mxu1 %v3120_v1 }
 0x307   :  { %v2922_v46 = vpop.eup %2921 }
 0x308   :  { %493 = vrot.lane.b32.xlu1 %v2922_v46, %s3125_s3  ;;  %v2924_v49 = vpop.eup %2923 }
 0x309   :  { %v448_v50 = vadd.f32 1.0, %v2924_v49 }
 0x30b   :  { %2925 = vrcp.f32 %v448_v50 }
 0x315   :  { %v2926_v51 = vpop.eup %2925 }
 0x316   :  { %v491_v52 = vsub.f32 1.0, %v2926_v51  ;;  %v497_v54 = vmul.f32 0.0, %v2926_v51 }
 0x37a   :  { %v494_v53 = vpop.permute.xlu1 %493 }
 0x37b   :  { %v496_v56 = vmul.f32 %v494_v53, %v491_v52 }
 0x37d   :  { %v3386_v57 = vadd.f32 %v497_v54, %v496_v56 }
 0x37f   :  { %2579 = vmatmul.mubr.msk.f32.vlgmr.msra.gmra.mrb[6].mxu1 %vm152_vm1, %v3386_v57 }
 0x380   :  { %2790 = vmatpush3.bf16.msra.mxu1 %v3291_v18  ;;  %2600 = vmatprep.mubr.msk.f32.mxu1 %vm3121_vm0, %v3122_v2 }
 0x381   :  { %2791 = vmatprep.subr.bf16.mxu1 %v3120_v1 }
 0x384   :  { %2793 = vmatpush3.bf16.msra.mxu1 %v3294_v21 }
 0x385   :  { %2800 = vmatprep.subr.bf16.mxu1 %v3120_v1 }
 0x3cc   :  { %v580_v58 = vpop.f32.mrb[4].mxu1 }
 0x3cd   :  { %v682_v60 = vadd.f32 %v580_v58, %v3330_v32  ;;  %v2569_v61 = vpop.f32.mrb[5].mxu1  ;;  %v657_v62 = vadd.f32 %v580_v58, %v3334_v41 }
 0x3cf   :  { %684 = vrot.lane.b32.xlu0 %v682_v60, %s3124_s20  ;;  %v2390_v0 = vmul.f32 -1.442695, %v657_v62 }
 0x3d1   :  { %2927 = vpow2.f32 %v2390_v0 }
 0x3db   :  { %v2928_v3 = vpop.eup %2927 }
 0x3dc   :  { %v661_v4 = vadd.f32 1.0, %v2928_v3 }
 0x3de   :  { %2929 = vrcp.f32 %v661_v4 }
 0x3e8   :  { %v2930_v6 = vpop.eup %2929 }
 0x3e9   :  { %v706_v33 = vsub.f32 1.0, %v2930_v6  ;;  %v712_v34 = vmul.f32 %v2930_v6, %v3373_v38 }
 0x441   :  { %v685_v7 = vpop.permute.xlu0 %684 }
 0x442   :  { %v687_v9 = vmul.f32 %v2930_v6, %v685_v7 }
 0x444   :  { %689 = vrot.lane.b32.xlu1 %v687_v9, %s3124_s20 }
 0x452   :  { %v653_v11 = vpop.f32.mrb[6].mxu1 }
 0x453   :  { %665 = vrot.lane.b32.xlu0 %v653_v11, %s3125_s3  ;;  %v2580_v12 = vpop.f32.mrb[7].mxu1  ;;  %v694_v14 = vadd.f32 %v653_v11, %v3368_v22 }
 0x457   :  { %696 = vrot.lane.b32.xlu0 %v694_v14, %s3126_s6 }
 0x4b6   :  { %v690_v15 = vpop.permute.xlu1 %689 }
 0x4b7   :  { %v692_v16 = vadd.f32 %v690_v15, %v3334_v41 }
 0x4b9   :  { %2931 = vtanh.f32 %v692_v16 }
 0x4c3   :  { %v2932_v17 = vpop.eup %2931 }
 0x4c4   :  { %708 = vrot.lane.b32.xlu1 %v2932_v17, %s3125_s3 }
 0x4c5   :  { %v666_v19 = vpop.permute.xlu0 %665 }
 0x4c6   :  { %v668_v20 = vadd.f32 %v666_v19, %v3361_v10  ;;  %v669_v44 = vadd.f32 %v666_v19, %v508_v37 }
 0x4c8   :  { %v2391_v23 = vmul.f32 -1.442695, %v668_v20  ;;  %v2392_v38 = vmul.f32 -1.442695, %v669_v44 }
 0x4c9   :  { %v697_v29 = vpop.permute.xlu0 %696 }
 0x4ca   :  { %2933 = vpow2.f32 %v2391_v23 }
 0x4d4   :  { %v2934_v24 = vpop.eup %2933 }
 0x4d5   :  { %v676_v27 = vadd.f32 1.0, %v2934_v24 }
 0x4d7   :  { %2935 = vrcp.f32 %v676_v27  ;;  %v731_v27 = vld [vmem:[#allocation2 + $0x58] sm:$0xff] }
 0x4e1   :  { %v2936_v28 = vpop.eup %2935 }
 0x4e2   :  { %v699_v30 = vmul.f32 %v2936_v28, %v697_v29 }
 0x4e4   :  { %701 = vrot.lane.b32.xlu0 %v699_v30, %s3124_s20 }
 0x536   :  { %v709_v31 = vpop.permute.xlu1 %708 }
 0x537   :  { %v711_v35 = vmul.f32 %v709_v31, %v706_v33 }
 0x539   :  { %v3408_v36 = vadd.f32 %v712_v34, %v711_v35 }
 0x53b   :  { %733 = vrot.lane.b32.xlu1 %v3408_v36, %s3125_s3 }
 0x556   :  { %v702_v39 = vpop.permute.xlu0 %701 }
 0x557   :  { %v704_v40 = vadd.f32 %v702_v39, %v508_v37 }
 0x559   :  { %2937 = vtanh.f32 %v704_v40 }
 0x55a   :  { %2939 = vpow2.f32 %v2392_v38 }
 0x563   :  { %v2938_v42 = vpop.eup %2937 }
 0x564   :  { %716 = vrot.lane.b32.xlu1 %v2938_v42, %s3125_s3  ;;  %v2940_v45 = vpop.eup %2939 }
 0x565   :  { %v677_v46 = vadd.f32 1.0, %v2940_v45 }
 0x567   :  { %2941 = vrcp.f32 %v677_v46 }
 0x571   :  { %v2942_v47 = vpop.eup %2941 }
 0x572   :  { %v714_v48 = vsub.f32 1.0, %v2942_v47  ;;  %v720_v50 = vmul.f32 %v2942_v47, %v3386_v57 }
 0x5ad   :  { %v734_v43 = vpop.permute.xlu1 %733 }
 0x5ae   :  { %2590 = vmatmul.mubr.msk.f32.vlgmr.msra.gmra.mrb[16].mxu0 %vm152_vm1, %v734_v43 }
 0x5af   :  { %2796 = vmatpush3.bf16.msra.mxu0 %v3261_v8  ;;  %2611 = vmatprep.mubr.msk.f32.mxu0 %vm3121_vm0, %v3122_v2 }
 0x5b0   :  { %2797 = vmatprep.subr.bf16.mxu0 %v3120_v1 }
 0x5b3   :  { %2799 = vmatpush3.bf16.msra.mxu0 %v3270_v13 }
 0x5b4   :  { %2806 = vmatprep.subr.bf16.mxu0 %v3120_v1 }
 0x5d6   :  { %v717_v49 = vpop.permute.xlu1 %716 }
 0x5d7   :  { %v719_v51 = vmul.f32 %v717_v49, %v714_v48 }
 0x5d9   :  { %v3421_v52 = vadd.f32 %v720_v50, %v719_v51 }
 0x5db   :  { %2601 = vmatmul.mubr.msk.f32.vlgmr.msra.gmra.mrb[8].mxu1 %vm152_vm1, %v3421_v52 }
 0x5dc   :  { %2802 = vmatpush3.bf16.msra.mxu1 %v3291_v18  ;;  %2622 = vmatprep.mubr.msk.f32.mxu1 %vm3121_vm0, %v3122_v2 }
 0x5dd   :  { %2803 = vmatprep.subr.bf16.mxu1 %v3120_v1 }
 0x5e0   :  { %2805 = vmatpush3.bf16.msra.mxu1 %v3294_v21 }
 0x5e1   :  { %2812 = vmatprep.subr.bf16.mxu1 %v3120_v1 }
 0x681   :  { %v803_v53 = vpop.f32.mrb[16].mxu0 }
 0x682   :  { %v905_v54 = vadd.f32 %v803_v53, %v3330_v32  ;;  %v2591_v56 = vpop.f32.mrb[17].mxu0  ;;  %v880_v60 = vadd.f32 %v803_v53, %v3345_v55 }
 0x684   :  { %907 = vrot.lane.b32.xlu0 %v905_v54, %s3124_s20  ;;  %v2395_v61 = vmul.f32 -1.442695, %v880_v60 }
 0x686   :  { %2943 = vpow2.f32 %v2395_v61 }
 0x690   :  { %v2944_v62 = vpop.eup %2943 }
 0x691   :  { %v884_v0 = vadd.f32 1.0, %v2944_v62 }
 0x693   :  { %2945 = vrcp.f32 %v884_v0 }
 0x69d   :  { %v2946_v3 = vpop.eup %2945 }
 0x69e   :  { %v929_v30 = vsub.f32 1.0, %v2946_v3  ;;  %v935_v31 = vmul.f32 %v2946_v3, %v3408_v36 }
 0x6ae   :  { %v876_v57 = vpop.f32.mrb[8].mxu1 }
 0x6af   :  { %888 = vrot.lane.b32.xlu0 %v876_v57, %s3125_s3  ;;  %v2602_v58 = vpop.f32.mrb[9].mxu1  ;;  %v917_v7 = vadd.f32 %v876_v57, %v3368_v22 }
 0x6f6   :  { %v908_v4 = vpop.permute.xlu0 %907 }
 0x6f7   :  { %v910_v6 = vmul.f32 %v2946_v3, %v908_v4 }
 0x6f9   :  { %912 = vrot.lane.b32.xlu1 %v910_v6, %s3124_s20 }
 0x6fd   :  { %919 = vrot.lane.b32.xlu1 %v917_v7, %s3126_s6 }
 0x721   :  { %v889_v9 = vpop.permute.xlu0 %888 }
 0x722   :  { %v891_v11 = vadd.f32 %v889_v9, %v3357_v5  ;;  %v892_v39 = vadd.f32 %v889_v9, %v731_v27 }
 0x724   :  { %v2396_v12 = vmul.f32 -1.442695, %v891_v11  ;;  %v2397_v40 = vmul.f32 -1.442695, %v892_v39 }
 0x726   :  { %2947 = vpow2.f32 %v2396_v12 }
 0x730   :  { %v2948_v14 = vpop.eup %2947 }
 0x731   :  { %v899_v15 = vadd.f32 1.0, %v2948_v14 }
 0x733   :  { %2949 = vrcp.f32 %v899_v15 }
 0x73d   :  { %v2950_v19 = vpop.eup %2949 }
 0x76b   :  { %v913_v16 = vpop.permute.xlu1 %912 }
 0x76c   :  { %v915_v17 = vadd.f32 %v913_v16, %v3345_v55 }
 0x76e   :  { %2951 = vtanh.f32 %v915_v17 }
 0x76f   :  { %v920_v20 = vpop.permute.xlu1 %919 }
 0x770   :  { %v922_v23 = vmul.f32 %v2950_v19, %v920_v20  ;;  %v954_v19 = vld [vmem:[#allocation2 + $0x48] sm:$0xff] }
 0x772   :  { %924 = vrot.lane.b32.xlu1 %v922_v23, %s3124_s20 }
 0x778   :  { %v2952_v24 = vpop.eup %2951 }
 0x779   :  { %931 = vrot.lane.b32.xlu0 %v2952_v24, %s3125_s3 }
 0x7e4   :  { %v925_v28 = vpop.permute.xlu1 %924 }
 0x7e5   :  { %v927_v29 = vadd.f32 %v925_v28, %v731_v27 }
 0x7e7   :  { %2953 = vtanh.f32 %v927_v29 }
 0x7e8   :  { %2955 = vpow2.f32 %v2397_v40 }
 0x7eb   :  { %v932_v33 = vpop.permute.xlu0 %931 }
 0x7ec   :  { %v934_v34 = vmul.f32 %v932_v33, %v929_v30 }
 0x7ee   :  { %v3443_v35 = vadd.f32 %v935_v31, %v934_v34 }
 0x7f0   :  { %956 = vrot.lane.b32.xlu0 %v3443_v35, %s3125_s3 }
 0x7f1   :  { %v2954_v37 = vpop.eup %2953 }
 0x7f2   :  { %939 = vrot.lane.b32.xlu1 %v2954_v37, %s3125_s3  ;;  %v2956_v42 = vpop.eup %2955 }
 0x7f3   :  { %v900_v43 = vadd.f32 1.0, %v2956_v42 }
 0x7f5   :  { %2957 = vrcp.f32 %v900_v43 }
 0x7ff   :  { %v2958_v44 = vpop.eup %2957 }
 0x800   :  { %v937_v36 = vsub.f32 1.0, %v2958_v44  ;;  %v943_v46 = vmul.f32 %v2958_v44, %v3421_v52 }
 0x862   :  { %v957_v38 = vpop.permute.xlu0 %956 }
 0x863   :  { %2612 = vmatmul.mubr.msk.f32.vlgmr.msra.gmra.mrb[18].mxu0 %vm152_vm1, %v957_v38 }
 0x864   :  { %v940_v45 = vpop.permute.xlu1 %939  ;;  %2808 = vmatpush3.bf16.msra.mxu0 %v3261_v8  ;;  %2633 = vmatprep.mubr.msk.f32.mxu0 %vm3121_vm0, %v3122_v2 }
 0x865   :  { %v942_v47 = vmul.f32 %v940_v45, %v937_v36  ;;  %2809 = vmatprep.subr.bf16.mxu0 %v3120_v1 }
 0x867   :  { %v3454_v48 = vadd.f32 %v943_v46, %v942_v47 }
 0x868   :  { %2811 = vmatpush3.bf16.msra.mxu0 %v3270_v13 }
 0x869   :  { %2623 = vmatmul.mubr.msk.f32.vlgmr.msra.gmra.mrb[10].mxu1 %vm152_vm1, %v3454_v48  ;;  %2818 = vmatprep.subr.bf16.mxu0 %v3120_v1 }
 0x86a   :  { %2814 = vmatpush3.bf16.msra.mxu1 %v3291_v18  ;;  %2644 = vmatprep.mubr.msk.f32.mxu1 %vm3121_vm0, %v3122_v2 }
 0x86b   :  { %2815 = vmatprep.subr.bf16.mxu1 %v3120_v1 }
 0x86e   :  { %2817 = vmatpush3.bf16.msra.mxu1 %v3294_v21 }
 0x86f   :  { %2824 = vmatprep.subr.bf16.mxu1 %v3120_v1 }
 0x936   :  { %v1026_v49 = vpop.f32.mrb[18].mxu0 }
 0x937   :  { %v1128_v50 = vadd.f32 %v1026_v49, %v3330_v32  ;;  %v2613_v51 = vpop.f32.mrb[19].mxu0  ;;  %v1103_v56 = vadd.f32 %v1026_v49, %v3348_v59 }
 0x939   :  { %1130 = vrot.lane.b32.xlu0 %v1128_v50, %s3124_s20  ;;  %v2400_v57 = vmul.f32 -1.442695, %v1103_v56 }
 0x93b   :  { %2959 = vpow2.f32 %v2400_v57 }
 0x93c   :  { %v1099_v52 = vpop.f32.mrb[10].mxu1 }
 0x93d   :  { %1111 = vrot.lane.b32.xlu1 %v1099_v52, %s3125_s3  ;;  %v2624_v53 = vpop.f32.mrb[11].mxu1  ;;  %v1140_v54 = vadd.f32 %v1099_v52, %v3368_v22 }
 0x941   :  { %1142 = vrot.lane.b32.xlu1 %v1140_v54, %s3126_s6 }
 0x945   :  { %v2960_v58 = vpop.eup %2959 }
 0x946   :  { %v1107_v60 = vadd.f32 1.0, %v2960_v58 }
 0x948   :  { %2961 = vrcp.f32 %v1107_v60 }
 0x952   :  { %v2962_v61 = vpop.eup %2961 }
 0x953   :  { %v1152_v29 = vsub.f32 1.0, %v2962_v61  ;;  %v1158_v33 = vmul.f32 %v2962_v61, %v3443_v35 }
 0x9ab   :  { %v1131_v62 = vpop.permute.xlu0 %1130 }
 0x9ac   :  { %v1133_v0 = vmul.f32 %v2962_v61, %v1131_v62 }
 0x9ae   :  { %1135 = vrot.lane.b32.xlu0 %v1133_v0, %s3124_s20 }
 0x9af   :  { %v1112_v3 = vpop.permute.xlu1 %1111 }
 0x9b0   :  { %v1114_v4 = vadd.f32 %v1112_v3, %v3353_v63  ;;  %v1115_v27 = vadd.f32 %v1112_v3, %v954_v19 }
 0x9b2   :  { %v2401_v6 = vmul.f32 -1.442695, %v1114_v4  ;;  %v2402_v28 = vmul.f32 -1.442695, %v1115_v27 }
 0x9b3   :  { %v1143_v12 = vpop.permute.xlu1 %1142 }
 0x9b4   :  { %2963 = vpow2.f32 %v2401_v6 }
 0x9be   :  { %v2964_v7 = vpop.eup %2963 }
 0x9bf   :  { %v1122_v9 = vadd.f32 1.0, %v2964_v7 }
 0x9c1   :  { %2965 = vrcp.f32 %v1122_v9 }
 0x9cb   :  { %v2966_v11 = vpop.eup %2965 }
 0x9cc   :  { %v1145_v14 = vmul.f32 %v2966_v11, %v1143_v12  ;;  %v949_v11 = vld [vmem:[#allocation2 + $0x38] sm:$0xff] }
 0x9ce   :  { %1147 = vrot.lane.b32.xlu0 %v1145_v14, %s3124_s20 }
 0xa20   :  { %v1136_v15 = vpop.permute.xlu0 %1135 }
 0xa21   :  { %v1138_v16 = vadd.f32 %v1136_v15, %v3348_v59 }
 0xa23   :  { %2967 = vtanh.f32 %v1138_v16 }
 0xa2d   :  { %v2968_v17 = vpop.eup %2967 }
 0xa2e   :  { %1154 = vrot.lane.b32.xlu1 %v2968_v17, %s3125_s3 }
 0xa40   :  { %v1148_v20 = vpop.permute.xlu0 %1147 }
 0xa41   :  { %v1150_v23 = vadd.f32 %v1148_v20, %v954_v19 }
 0xa43   :  { %2969 = vtanh.f32 %v1150_v23 }
 0xa44   :  { %2971 = vpow2.f32 %v2402_v28 }
 0xa4d   :  { %v2970_v24 = vpop.eup %2969 }
 0xa4e   :  { %1162 = vrot.lane.b32.xlu1 %v2970_v24, %s3125_s3  ;;  %v2972_v37 = vpop.eup %2971 }
 0xa4f   :  { %v1123_v39 = vadd.f32 1.0, %v2972_v37 }
 0xa51   :  { %2973 = vrcp.f32 %v1123_v39 }
 0xa5b   :  { %v2974_v40 = vpop.eup %2973 }
 0xa5c   :  { %v1160_v42 = vsub.f32 1.0, %v2974_v40  ;;  %v1166_v44 = vmul.f32 %v2974_v40, %v3454_v48 }
 0xaa0   :  { %v1155_v30 = vpop.permute.xlu1 %1154 }
 0xaa1   :  { %v1157_v31 = vmul.f32 %v1155_v30, %v1152_v29 }
 0xaa3   :  { %v3479_v34 = vadd.f32 %v1158_v33, %v1157_v31 }
 0xaa5   :  { %1169 = vrot.lane.b32.xlu0 %v3479_v34, %s3125_s3 }
 0xac0   :  { %v1163_v43 = vpop.permute.xlu1 %1162 }
 0xac1   :  { %v1165_v38 = vmul.f32 %v1163_v43, %v1160_v42 }
 0xac3   :  { %v3484_v36 = vadd.f32 %v1166_v44, %v1165_v38 }
 0xac5   :  { %2645 = vmatmul.mubr.msk.f32.vlgmr.msra.gmra.mrb[12].mxu1 %vm152_vm1, %v3484_v36 }
 0xac6   :  { %2826 = vmatpush3.bf16.msra.mxu1 %v3291_v18  ;;  %2666 = vmatprep.mubr.msk.f32.mxu1 %vm3121_vm0, %v3122_v2 }
 0xac7   :  { %2827 = vmatprep.subr.bf16.mxu1 %v3120_v1 }
 0xaca   :  { %2829 = vmatpush3.bf16.msra.mxu1 %v3294_v21 }
 0xacb   :  { %2836 = vmatprep.subr.bf16.mxu1 %v3120_v1 }
 0xb17   :  { %v1170_v35 = vpop.permute.xlu0 %1169 }
 0xb18   :  { %2634 = vmatmul.mubr.msk.f32.vlgmr.msra.gmra.mrb[20].mxu0 %vm152_vm1, %v1170_v35 }
 0xb19   :  { %2820 = vmatpush3.bf16.msra.mxu0 %v3261_v8  ;;  %2655 = vmatprep.mubr.msk.f32.mxu0 %vm3121_vm0, %v3122_v2 }
 0xb1a   :  { %2821 = vmatprep.subr.bf16.mxu0 %v3120_v1 }
 0xb1d   :  { %2823 = vmatpush3.bf16.msra.mxu0 %v3270_v13 }
 0xb1e   :  { %2830 = vmatprep.subr.bf16.mxu0 %v3120_v1 }
 0xb98   :  { %v1312_v45 = vpop.f32.mrb[12].mxu1 }
 0xb99   :  { %1324 = vrot.lane.b32.xlu1 %v1312_v45, %s3125_s3  ;;  %v2646_v46 = vpop.f32.mrb[13].mxu1  ;;  %v1353_v50 = vadd.f32 %v1312_v45, %v3368_v22 }
 0xbeb   :  { %v1239_v47 = vpop.f32.mrb[20].mxu0 }
 0xbec   :  { %v1341_v48 = vadd.f32 %v1239_v47, %v3330_v32  ;;  %v2635_v49 = vpop.f32.mrb[21].mxu0  ;;  %v1316_v51 = vadd.f32 %v1239_v47, %v3353_v63 }
 0xbee   :  { %1343 = vrot.lane.b32.xlu0 %v1341_v48, %s3124_s20  ;;  %v2405_v53 = vmul.f32 -1.442695, %v1316_v51 }
 0xbf0   :  { %2975 = vpow2.f32 %v2405_v53 }
 0xbf2   :  { %1355 = vrot.lane.b32.xlu0 %v1353_v50, %s3126_s6 }
 0xbfa   :  { %v2976_v57 = vpop.eup %2975 }
 0xbfb   :  { %v1320_v58 = vadd.f32 1.0, %v2976_v57 }
 0xc0b   :  { %v1325_v52 = vpop.permute.xlu1 %1324 }
 0xc0c   :  { %v1327_v54 = vadd.f32 %v1325_v52, %v3348_v59  ;;  %v1328_v17 = vadd.f32 %v1325_v52, %v949_v11 }
 0xc0e   :  { %v2406_v56 = vmul.f32 -1.442695, %v1327_v54  ;;  %v2407_v19 = vmul.f32 -1.442695, %v1328_v17 }
 0xc10   :  { %2977 = vpow2.f32 %v2406_v56 }
 0xc11   :  { %2979 = vrcp.f32 %v1320_v58 }
 0xc1a   :  { %v2978_v60 = vpop.eup %2977 }
 0xc1b   :  { %v1335_v61 = vadd.f32 1.0, %v2978_v60  ;;  %v2980_v62 = vpop.eup %2979 }
 0xc1c   :  { %v1365_v24 = vsub.f32 1.0, %v2980_v62  ;;  %v1371_v28 = vmul.f32 %v2980_v62, %v3479_v34 }
 0xc1d   :  { %2981 = vrcp.f32 %v1335_v61  ;;  %v726_v61 = vld [vmem:[#allocation2 + $0x28] sm:$0xff] }
 0xc27   :  { %v2982_v4 = vpop.eup %2981 }
 0xc60   :  { %v1344_v0 = vpop.permute.xlu0 %1343 }
 0xc61   :  { %v1346_v3 = vmul.f32 %v2980_v62, %v1344_v0 }
 0xc63   :  { %1348 = vrot.lane.b32.xlu1 %v1346_v3, %s3124_s20 }
 0xc64   :  { %v1356_v6 = vpop.permute.xlu0 %1355 }
 0xc65   :  { %v1358_v7 = vmul.f32 %v2982_v4, %v1356_v6 }
 0xc67   :  { %1360 = vrot.lane.b32.xlu0 %v1358_v7, %s3124_s20 }
 0xcd5   :  { %v1349_v59 = vpop.permute.xlu1 %1348 }
 0xcd6   :  { %v1351_v9 = vadd.f32 %v1349_v59, %v3353_v63 }
 0xcd8   :  { %2983 = vtanh.f32 %v1351_v9 }
 0xcd9   :  { %v1361_v12 = vpop.permute.xlu0 %1360 }
 0xcda   :  { %v1363_v14 = vadd.f32 %v1361_v12, %v949_v11 }
 0xcdc   :  { %2985 = vtanh.f32 %v1363_v14 }
 0xcdd   :  { %2987 = vpow2.f32 %v2407_v19 }
 0xce2   :  { %v2984_v15 = vpop.eup %2983 }
 0xce3   :  { %1367 = vrot.lane.b32.xlu1 %v2984_v15, %s3125_s3 }
 0xce6   :  { %v2986_v16 = vpop.eup %2985 }
 0xce7   :  { %1375 = vrot.lane.b32.xlu0 %v2986_v16, %s3125_s3  ;;  %v2988_v20 = vpop.eup %2987 }
 0xce8   :  { %v1336_v23 = vadd.f32 1.0, %v2988_v20 }
 0xcea   :  { %2989 = vrcp.f32 %v1336_v23 }
 0xcf4   :  { %v2990_v27 = vpop.eup %2989 }
 0xcf5   :  { %v1373_v33 = vsub.f32 1.0, %v2990_v27  ;;  %v1379_v37 = vmul.f32 %v2990_v27, %v3484_v36 }
 0xd55   :  { %v1368_v63 = vpop.permute.xlu1 %1367 }
 0xd56   :  { %v1370_v29 = vmul.f32 %v1368_v63, %v1365_v24 }
 0xd58   :  { %v3514_v30 = vadd.f32 %v1371_v28, %v1370_v29 }
 0xd59   :  { %v1376_v31 = vpop.permute.xlu0 %1375 }
 0xd5a   :  { %v1378_v39 = vmul.f32 %v1376_v31, %v1373_v33  ;;  %1382 = vrot.lane.b32.xlu1 %v3514_v30, %s3125_s3 }
 0xd5c   :  { %v3519_v40 = vadd.f32 %v1379_v37, %v1378_v39 }
 0xd5e   :  { %2667 = vmatmul.mubr.msk.f32.vlgmr.msra.gmra.mrb[14].mxu1 %vm152_vm1, %v3519_v40 }
 0xd5f   :  { %2838 = vmatpush3.bf16.msra.mxu1 %v3291_v18  ;;  %2688 = vmatprep.mubr.msk.f32.mxu1 %vm3121_vm0, %v3122_v2 }
 0xd60   :  { %2839 = vmatprep.subr.bf16.mxu1 %v3120_v1 }
 0xd63   :  { %2841 = vmatpush3.bf16.msra.mxu1 %v3294_v21 }
 0xd64   :  { %2848 = vmatprep.subr.bf16.mxu1 %v3120_v1 }
 0xdcc   :  { %v1383_v34 = vpop.permute.xlu1 %1382 }
 0xdcd   :  { %2656 = vmatmul.mubr.msk.f32.vlgmr.msra.gmra.mrb[22].mxu0 %vm152_vm1, %v1383_v34 }
 0xdce   :  { %2832 = vmatpush3.bf16.msra.mxu0 %v3261_v8  ;;  %2677 = vmatprep.mubr.msk.f32.mxu0 %vm3121_vm0, %v3122_v2 }
 0xdcf   :  { %2833 = vmatprep.subr.bf16.mxu0 %v3120_v1 }
 0xdd2   :  { %2835 = vmatpush3.bf16.msra.mxu0 %v3270_v13 }
 0xdd3   :  { %2842 = vmatprep.subr.bf16.mxu0 %v3120_v1 }
 0xe31   :  { %v1525_v42 = vpop.f32.mrb[14].mxu1 }
 0xe32   :  { %1537 = vrot.lane.b32.xlu0 %v1525_v42, %s3125_s3  ;;  %v2668_v43 = vpop.f32.mrb[15].mxu1  ;;  %v1566_v44 = vadd.f32 %v1525_v42, %v3368_v22 }
 0xe36   :  { %1568 = vrot.lane.b32.xlu0 %v1566_v44, %s3126_s6  ;;  %v503_v44 = vld [vmem:[#allocation2 + $0x18] sm:$0xff] }
 0xea0   :  { %v1452_v38 = vpop.f32.mrb[22].mxu0 }
 0xea1   :  { %v1554_v36 = vadd.f32 %v1452_v38, %v3330_v32  ;;  %v2657_v35 = vpop.f32.mrb[23].mxu0  ;;  %v1529_v53 = vadd.f32 %v1452_v38, %v3357_v5 }
 0xea3   :  { %1556 = vrot.lane.b32.xlu1 %v1554_v36, %s3124_s20  ;;  %v2410_v54 = vmul.f32 -1.442695, %v1529_v53 }
 0xea4   :  { %v1538_v45 = vpop.permute.xlu0 %1537 }
 0xea5   :  { %v1540_v46 = vadd.f32 %v1538_v45, %v3345_v55  ;;  %v1541_v7 = vadd.f32 %v1538_v45, %v726_v61 }
 0xea7   :  { %v2411_v47 = vmul.f32 -1.442695, %v1540_v46  ;;  %v2412_v59 = vmul.f32 -1.442695, %v1541_v7 }
 0xea8   :  { %v1569_v51 = vpop.permute.xlu0 %1568 }
 0xea9   :  { %2991 = vpow2.f32 %v2411_v47 }
 0xeb3   :  { %v2992_v48 = vpop.eup %2991 }
 0xeb4   :  { %v1548_v49 = vadd.f32 1.0, %v2992_v48 }
 0xeb6   :  { %2993 = vrcp.f32 %v1548_v49 }
 0xeb7   :  { %2995 = vpow2.f32 %v2410_v54 }
 0xec0   :  { %v2994_v50 = vpop.eup %2993 }
 0xec1   :  { %v1571_v52 = vmul.f32 %v2994_v50, %v1569_v51  ;;  %v2996_v56 = vpop.eup %2995 }
 0xec2   :  { %v1533_v57 = vadd.f32 1.0, %v2996_v56 }
 0xec3   :  { %1573 = vrot.lane.b32.xlu0 %v1571_v52, %s3124_s20 }
 0xec4   :  { %2997 = vrcp.f32 %v1533_v57 }
 0xece   :  { %v2998_v58 = vpop.eup %2997 }
 0xecf   :  { %v1584_v24 = vmul.f32 %v2998_v58, %v3514_v30 }
 0xf15   :  { %v1557_v60 = vpop.permute.xlu1 %1556 }
 0xf16   :  { %v1559_v55 = vmul.f32 %v2998_v58, %v1557_v60 }
 0xf18   :  { %1561 = vrot.lane.b32.xlu1 %v1559_v55, %s3124_s20 }
 0xf35   :  { %v1574_v62 = vpop.permute.xlu0 %1573 }
 0xf36   :  { %v1576_v0 = vadd.f32 %v1574_v62, %v726_v61 }
 0xf38   :  { %2999 = vtanh.f32 %v1576_v0 }
 0xf42   :  { %v3000_v3 = vpop.eup %2999 }
 0xf43   :  { %1588 = vrot.lane.b32.xlu0 %v3000_v3, %s3125_s3 }
 0xf8a   :  { %v1562_v4 = vpop.permute.xlu1 %1561 }
 0xf8b   :  { %v1564_v6 = vadd.f32 %v1562_v4, %v3357_v5  ;;  %v1578_v5 = vsub.f32 1.0, %v2998_v58 }
 0xf8d   :  { %3001 = vtanh.f32 %v1564_v6 }
 0xf8e   :  { %3003 = vpow2.f32 %v2412_v59 }
 0xf97   :  { %v3002_v9 = vpop.eup %3001 }
 0xf98   :  { %1580 = vrot.lane.b32.xlu1 %v3002_v9, %s3125_s3  ;;  %v3004_v11 = vpop.eup %3003 }
 0xf99   :  { %v1549_v12 = vadd.f32 1.0, %v3004_v11 }
 0xf9b   :  { %3005 = vrcp.f32 %v1549_v12 }
 0xfa5   :  { %v3006_v14 = vpop.eup %3005 }
 0xfa6   :  { %v1586_v15 = vsub.f32 1.0, %v3006_v14  ;;  %v1592_v17 = vmul.f32 %v3006_v14, %v3519_v40 }
 0xfb5   :  { %v1589_v16 = vpop.permute.xlu0 %1588 }
 0xfb6   :  { %v1591_v19 = vmul.f32 %v1589_v16, %v1586_v15  ;;  %v3043_v16 = vld [vmem:[#allocation2] sm:$0xff] }
 0xfb8   :  { %v3549_v20 = vadd.f32 %v1592_v17, %v1591_v19 }
 0xfba   :  { %2689 = vmatmul.mubr.msk.f32.vlgmr.msra.gmra.mrb[16].mxu1 %vm152_vm1, %v3549_v20 }
 0xfbb   :  { %2850 = vmatpush3.bf16.msra.mxu1 %v3291_v18  ;;  %2710 = vmatprep.mubr.msk.f32.mxu1 %vm3121_vm0, %v3122_v2 }
 0xfbc   :  { %2851 = vmatprep.subr.bf16.mxu1 %v3120_v1 }
 0xfbf   :  { %2853 = vmatpush3.bf16.msra.mxu1 %v3294_v21 }
 0xfc0   :  { %2858 = vmatprep.subr.bf16.mxu1 %v3120_v1 }
0x100a   :  { %v1581_v23 = vpop.permute.xlu1 %1580 }
0x100b   :  { %v1583_v27 = vmul.f32 %v1581_v23, %v1578_v5 }
0x100d   :  { %v3560_v63 = vadd.f32 %v1584_v24, %v1583_v27 }
0x100f   :  { %1595 = vrot.lane.b32.xlu1 %v3560_v63, %s3125_s3 }
0x1081   :  { %v1596_v18 = vpop.permute.xlu1 %1595 }
0x1082   :  { %2678 = vmatmul.mubr.msk.f32.vlgmr.msra.gmra.mrb[24].mxu0 %vm152_vm1, %v1596_v18 }
0x1083   :  { %2844 = vmatpush3.bf16.msra.mxu0 %v3261_v8  ;;  %2699 = vmatprep.mubr.msk.f32.mxu0 %vm3121_vm0, %v3122_v2 }
0x1084   :  { %2845 = vmatprep.subr.bf16.mxu0 %v3120_v1 }
0x1087   :  { %2847 = vmatpush3.bf16.msra.mxu0 %v3270_v13 }
0x108d   :  { %v1738_v21 = vpop.f32.mrb[16].mxu1 }
0x108e   :  { %v1779_v28 = vadd.f32 %v1738_v21, %v3368_v22  ;;  %1750 = vrot.lane.b32.xlu0 %v1738_v21, %s3125_s3  ;;  %v2690_v29 = vpop.f32.mrb[17].mxu1 }
0x1090   :  { %1781 = vrot.lane.b32.xlu1 %v1779_v28, %s3126_s6 }
0x1100   :  { %v1751_v30 = vpop.permute.xlu0 %1750 }
0x1101   :  { %v1753_v33 = vadd.f32 %v1751_v30, %v3334_v41  ;;  %v1754_v51 = vadd.f32 %v1751_v30, %v503_v44 }
0x1102   :  { %v1782_v40 = vpop.permute.xlu1 %1781 }
0x1103   :  { %v2416_v31 = vmul.f32 -1.442695, %v1753_v33  ;;  %v2417_v52 = vmul.f32 -1.442695, %v1754_v51 }
0x1105   :  { %3007 = vpow2.f32 %v2416_v31 }
0x110f   :  { %v3008_v8 = vpop.eup %3007 }
0x1110   :  { %v1761_v37 = vadd.f32 1.0, %v3008_v8 }
0x1112   :  { %3009 = vrcp.f32 %v1761_v37 }
0x111c   :  { %v3010_v39 = vpop.eup %3009 }
0x111d   :  { %v1784_v34 = vmul.f32 %v3010_v39, %v1782_v40  ;;  %v3044_v39 = vld [vmem:[#allocation2 + $0x70] sm:$0xff] }
0x111f   :  { %1786 = vrot.lane.b32.xlu1 %v1784_v34, %s3124_s20 }
0x1155   :  { %v1665_v13 = vpop.f32.mrb[24].mxu0 }
0x1156   :  { %v1767_v42 = vadd.f32 %v1665_v13, %v3330_v32  ;;  %v2679_v43 = vpop.f32.mrb[25].mxu0  ;;  %v1742_v35 = vadd.f32 %v1665_v13, %v3361_v10 }
0x1158   :  { %1769 = vrot.lane.b32.xlu0 %v1767_v42, %s3124_s20  ;;  %v2415_v45 = vmul.f32 -1.442695, %v1742_v35 }
0x1191   :  { %v1787_v38 = vpop.permute.xlu1 %1786 }
0x1192   :  { %v1789_v36 = vadd.f32 %v1787_v38, %v503_v44 }
0x1194   :  { %3011 = vtanh.f32 %v1789_v36 }
0x1195   :  { %3013 = vpow2.f32 %v2415_v45 }
0x119e   :  { %v3012_v41 = vpop.eup %3011 }
0x119f   :  { %1801 = vrot.lane.b32.xlu1 %v3012_v41, %s3125_s3  ;;  %v3014_v46 = vpop.eup %3013 }
0x11a0   :  { %v1746_v47 = vadd.f32 1.0, %v3014_v46 }
0x11a2   :  { %3015 = vrcp.f32 %v1746_v47 }
0x11a3   :  { %3017 = vpow2.f32 %v2417_v52 }
0x11ac   :  { %v3016_v48 = vpop.eup %3015 }
0x11ad   :  { %v3018_v53 = vpop.eup %3017  ;;  %v1791_v4 = vsub.f32 1.0, %v3016_v48  ;;  %v1797_v7 = vmul.f32 %v3016_v48, %v3560_v63 }
0x11ae   :  { %v1762_v54 = vadd.f32 1.0, %v3018_v53 }
0x11b0   :  { %3019 = vrcp.f32 %v1762_v54 }
0x11ba   :  { %v3020_v56 = vpop.eup %3019 }
0x11bb   :  { %v1799_v57 = vsub.f32 1.0, %v3020_v56  ;;  %v1805_v60 = vmul.f32 %v3020_v56, %v3549_v20  ;;  %v2027_v56 = vand.u32 127, %v102_v25 }
0x11ca   :  { %v1770_v49 = vpop.permute.xlu0 %1769 }
0x11cb   :  { %v1772_v50 = vmul.f32 %v3016_v48, %v1770_v49 }
0x11cd   :  { %1774 = vrot.lane.b32.xlu0 %v1772_v50, %s3124_s20  ;;  %v2033_v50 = vmul.u32 2, %v3321_v26 }
0x11cf   :  { %v2036_v51 = vadd.s32 1, %v2033_v50  ;;  %v2424_v52 = vadd.s32 4294967294, %v2033_v50  ;;  %vm2039_vm3 = vcmp.lt.s32.totalorder %v2033_v50, 2 }
0x11d1   :  { %v2425_v53 = vadd.s32 4294967294, %v2036_v51  ;;  %v2043_v54 = vadd.s32 8, %v2424_v52  ;;  %vm2040_vm4 = vcmp.lt.s32.totalorder %v2036_v51, 2 }
0x1211   :  { %v1802_v58 = vpop.permute.xlu1 %1801 }
0x1212   :  { %v1804_v55 = vmul.f32 %v1802_v58, %v1799_v57  ;;  %v2044_v57 = vadd.s32 8, %v2425_v53 }
0x1214   :  { %v1806_v61 = vadd.f32 %v1805_v60, %v1804_v55  ;;  %v2045_v60 = vsel %vm2039_vm3, %v2033_v50, %v2043_v54  ;;  %v2046_v55 = vsel %vm2040_vm4, %v2036_v51, %v2044_v57 }
0x1215   :  { %vm2047_vm5 = vcmp.eq.s32.totalorder %v2027_v56, %v2045_v60  ;;  %vm2048_vm8 = vcmp.eq.s32.totalorder %v2027_v56, %v2046_v55 }
0x1216   :  { %2711 = vmatmul.mubr.msk.f32.vlgmr.msra.gmra.mrb[18].mxu1 %vm152_vm1, %v1806_v61  ;;  %vm2051_vm9 = vmand %vm2047_vm5, %vm2049_vm6 }
0x1217   :  { %2736 = vmatprep.mubr.msk.f32.mxu1 %vm3121_vm0, %v3122_v2  ;;  %vm2052_vm10 = vmand %vm2048_vm8, %vm2049_vm6 }
0x123f   :  { %v1775_v62 = vpop.permute.xlu0 %1774 }
0x1240   :  { %v1777_v0 = vadd.f32 %v1775_v62, %v3361_v10 }
0x1242   :  { %3021 = vtanh.f32 %v1777_v0 }
0x124c   :  { %v3022_v3 = vpop.eup %3021 }
0x124d   :  { %1793 = vrot.lane.b32.xlu0 %v3022_v3, %s3125_s3  ;;  %v2053_v3 = vsel %vm2051_vm9, 1.0, %v3122_v2 }
0x12bf   :  { %v1794_v6 = vpop.permute.xlu0 %1793 }
0x12c0   :  { %v1796_v59 = vmul.f32 %v1794_v6, %v1791_v4 }
0x12c2   :  { %v3587_v9 = vadd.f32 %v1797_v7, %v1796_v59 }
0x12c4   :  { %1808 = vrot.lane.b32.xlu1 %v3587_v9, %s3125_s3 }
0x12e9   :  { %v1951_v11 = vpop.f32.mrb[18].mxu1 }
0x12ea   :  { %v1992_v12 = vadd.f32 %v1951_v11, %v3368_v22  ;;  %1963 = vrot.lane.b32.xlu0 %v1951_v11, %s3125_s3  ;;  %v2712_v10 = vpop.f32.mrb[19].mxu1  ;;  %v279_v22 = vld [vmem:[#allocation2 + $0x8] sm:$0xff] }
0x12eb   :  { %v2150_v10 = vld [vmem:[%s3668_s7 + $0x8] sm:$0xff] }
0x12ec   :  { %1994 = vrot.lane.b32.xlu1 %v1992_v12, %s3126_s6  ;;  %v2054_v12 = vsel %vm2052_vm10, 1.0, %v3122_v2 }
0x1336   :  { %v1809_v14 = vpop.permute.xlu1 %1808 }
0x1337   :  { %2700 = vmatmul.mubr.msk.f32.vlgmr.msra.gmra.mrb[26].mxu0 %vm152_vm1, %v1809_v14  ;;  %v2151_v14 = vld [vmem:[%s3668_s7 + $0x10] sm:$0xff] }
0x1338   :  { %2717 = vmatprep.mubr.msk.f32.mxu0 %vm2062_vm7, %v2053_v3 }
0x135c   :  { %v1964_v15 = vpop.permute.xlu0 %1963 }
0x135d   :  { %v1966_v17 = vadd.f32 %v3043_v16, %v1964_v15  ;;  %v1967_v33 = vadd.f32 %v1964_v15, %v279_v22  ;;  %v2152_v16 = vld [vmem:[%s3668_s7 + $0x18] sm:$0xff] }
0x135e   :  { %v1995_v24 = vpop.permute.xlu1 %1994 }
0x135f   :  { %v2421_v19 = vmul.f32 -1.442695, %v1966_v17  ;;  %v2422_v31 = vmul.f32 -1.442695, %v1967_v33  ;;  %v2862_v17 = vpack.c.bf16 %v2152_v16, %v2151_v14 }
0x1361   :  { %3023 = vpow2.f32 %v2421_v19  ;;  %v2154_v19 = vld [vmem:[%s3668_s7 + $0x28] sm:$0xff] }
0x136b   :  { %v3024_v20 = vpop.eup %3023 }
0x136c   :  { %v1974_v5 = vadd.f32 1.0, %v3024_v20 }
0x136e   :  { %3025 = vrcp.f32 %v1974_v5  ;;  %v2155_v5 = vld [vmem:[%s3668_s7 + $0x30] sm:$0xff] }
0x1378   :  { %v3026_v23 = vpop.eup %3025 }
0x1379   :  { %v1997_v27 = vmul.f32 %v3026_v23, %v1995_v24  ;;  %v2156_v23 = vld [vmem:[%s3668_s7 + $0x38] sm:$0xff] }
0x137a   :  { %v2868_v24 = vpack.c.bf16 %v2156_v23, %v2155_v5 }
0x137b   :  { %1999 = vrot.lane.b32.xlu1 %v1997_v27, %s3124_s20  ;;  %v2238_v27 = vld [vmem:[#allocation8] sm:$0xff] }
0x13ed   :  { %v2000_v63 = vpop.permute.xlu1 %1999 }
0x13ee   :  { %v2002_v18 = vadd.f32 %v2000_v63, %v279_v22  ;;  %v2239_v22 = vld [vmem:[#allocation8 + $0x8] sm:$0xff]  ;;  %v2240_v63 = vld [vmem:[#allocation8 + $0x10] sm:$0xff] }
0x13f0   :  { %3027 = vtanh.f32 %v2002_v18  ;;  %v2871_v18 = vpack.c.bf16 %v2239_v22, %v2238_v27 }
0x13f1   :  { %3029 = vpow2.f32 %v2422_v31 }
0x13fa   :  { %v3028_v21 = vpop.eup %3027 }
0x13fb   :  { %2014 = vrot.lane.b32.xlu1 %v3028_v21, %s3125_s3  ;;  %v3030_v8 = vpop.eup %3029  ;;  %v2241_v21 = vld [vmem:[#allocation8 + $0x18] sm:$0xff] }
0x13fc   :  { %v1975_v37 = vadd.f32 1.0, %v3030_v8 }
0x13fe   :  { %3031 = vrcp.f32 %v1975_v37 }
0x1408   :  { %v3032_v13 = vpop.eup %3031 }
0x1409   :  { %v2012_v42 = vsub.f32 1.0, %v3032_v13  ;;  %v2018_v38 = vmul.f32 %v3032_v13, %v1806_v61 }
0x140a   :  { %v1878_v28 = vpop.f32.mrb[26].mxu0 }
0x140b   :  { %v1980_v29 = vadd.f32 %v1878_v28, %v3330_v32  ;;  %v2701_v30 = vpop.f32.mrb[27].mxu0  ;;  %v1955_v40 = vadd.f32 %v3044_v39, %v1878_v28  ;;  %v2874_v28 = vpack.c.bf16 %v2241_v21, %v2240_v63 }
0x140c   :  { %v2243_v30 = vld [vmem:[#allocation8 + $0x28] sm:$0xff] }
0x140d   :  { %1982 = vrot.lane.b32.xlu0 %v1980_v29, %s3124_s20  ;;  %v2420_v34 = vmul.f32 -1.442695, %v1955_v40  ;;  %v2242_v29 = vld [vmem:[#allocation8 + $0x20] sm:$0xff]  ;;  %v2244_v40 = vld [vmem:[#allocation8 + $0x30] sm:$0xff] }
0x140e   :  { %v2877_v33 = vpack.c.bf16 %v2243_v30, %v2242_v29 }
0x140f   :  { %3033 = vpow2.f32 %v2420_v34  ;;  %v2245_v34 = vld [vmem:[#allocation8 + $0x38] sm:$0xff] }
0x1410   :  { %v2880_v13 = vpack.c.bf16 %v2245_v34, %v2244_v40 }
0x1419   :  { %v3034_v44 = vpop.eup %3033 }
0x141a   :  { %v1959_v41 = vadd.f32 1.0, %v3034_v44 }
0x141c   :  { %3035 = vrcp.f32 %v1959_v41 }
0x1426   :  { %v3036_v35 = vpop.eup %3035 }
0x1427   :  { %v2004_v58 = vsub.f32 1.0, %v3036_v35  ;;  %v2010_v62 = vmul.f32 %v3036_v35, %v3587_v9  ;;  %v2149_v9 = vld [vmem:[%s3668_s7] sm:$0xff] }
0x1428   :  { %v2859_v15 = vpack.c.bf16 %v2150_v10, %v2149_v9 }
0x142a   :  { %2860 = vmatpush3.bf16.msra.mxu1 %v2859_v15 }
0x142b   :  { %2861 = vmatprep.subr.bf16.mxu1 %v3120_v1 }
0x142e   :  { %2863 = vmatpush3.bf16.msra.mxu1 %v2862_v17 }
0x142f   :  { %2864 = vmatprep.subr.bf16.mxu1 %v3120_v1 }
0x146d   :  { %v2015_v43 = vpop.permute.xlu1 %2014 }
0x146e   :  { %v2017_v36 = vmul.f32 %v2015_v43, %v2012_v42  ;;  %v2428_v42 = vld [vmem:[%s3669_s8] ss:$0 sm:$0xff] }
0x1470   :  { %v2019_v32 = vadd.f32 %v2018_v38, %v2017_v36 }
0x1472   :  { %2021 = vrot.lane.b32.xlu1 %v2019_v32, %s3126_s6 }
0x147f   :  { %v1983_v45 = vpop.permute.xlu0 %1982 }
0x1480   :  { %v1985_v46 = vmul.f32 %v3036_v35, %v1983_v45  ;;  %v2432_v45 = vld [vmem:[%s3672_s11] ss:$0 sm:$0xff] }
0x1482   :  { %1987 = vrot.lane.b32.xlu0 %v1985_v46, %s3124_s20 }
0x14e4   :  { %v2022_v4 = vpop.permute.xlu1 %2021 }
0x14f4   :  { %v1988_v47 = vpop.permute.xlu0 %1987 }
0x14f5   :  { %v1990_v48 = vadd.f32 %v3044_v39, %v1988_v47 }
0x14f7   :  { %3037 = vtanh.f32 %v1990_v48 }
0x1501   :  { %v3038_v49 = vpop.eup %3037 }
0x1502   :  { %2006 = vrot.lane.b32.xlu0 %v3038_v49, %s3125_s3  ;;  %v2433_v49 = vld [vmem:[#allocation3] ss:$0 sm:$0xff] }
0x1574   :  { %v2007_v61 = vpop.permute.xlu0 %2006 }
0x1575   :  { %v2009_v0 = vmul.f32 %v2007_v61, %v2004_v58 }
0x1577   :  { %v2011_v25 = vadd.f32 %v2010_v62, %v2009_v0 }
0x1579   :  { %v2894_v6 = vpack.i.bf16 %v2022_v4, %v2011_v25 }
0x157b   :  { %2895 = vrot.lane.b32.xlu0 %v2894_v6, %s3125_s3 }
0x15ed   :  { %v2896_v7 = vpop.permute.xlu0 %2895 }
0x15ee   :  { %v2898_v59 = vunpack.i.h.bf16 %v2896_v7  ;;  %v2897_v26 = vunpack.i.l.bf16 %v2896_v7 }
0x15f0   :  { %v2854_v11 = vpack.c.bf16 %v2898_v59, %v2897_v26 }
0x15f2   :  { %2855 = vmatprep.subr.bf16.mxu0 %v2854_v11 }
0x15f3   :  { %2857 = vmatpush3.bf16.msra.mxu0 %v2854_v11 }
0x15f4   :  { %2870 = vmatprep.subr.bf16.mxu0 %v3120_v1 }
0x15f6   :  { %2718 = vmatmul.mubr.msk.f32.vlgmr.msra.gmra.mrb[28].mxu0 %vm2062_vm7, %v2054_v12 }
0x15f7   :  { %2755 = vmatprep.mubr.msk.f32.mxu0 %vm3121_vm0, %v3122_v2  ;;  %v2153_v2 = vld [vmem:[%s3668_s7 + $0x20] sm:$0xff]  ;;  %2872 = vmatpush3.bf16.msra.mxu0 %v2871_v18 }
0x15f8   :  { %v2865_v20 = vpack.c.bf16 %v2154_v19, %v2153_v2  ;;  %2873 = vmatprep.subr.bf16.mxu0 %v3120_v1 }
0x15fa   :  { %2866 = vmatpush3.bf16.msra.mxu1 %v2865_v20 }
0x15fb   :  { %2867 = vmatprep.subr.bf16.mxu1 %v3120_v1  ;;  %2875 = vmatpush3.bf16.msra.mxu0 %v2874_v28 }
0x15fc   :  { %2876 = vmatprep.subr.bf16.mxu0 %v3120_v1 }
0x15fe   :  { %2869 = vmatpush3.bf16.msra.mxu1 %v2868_v24 }
0x15ff   :  { %2878 = vmatpush3.bf16.msra.mxu0 %v2877_v33 }
0x1600   :  { %2879 = vmatprep.subr.bf16.mxu0 %v3120_v1  ;;  %v2430_v1 = vld [vmem:[%s3671_s10] ss:$0 sm:$0xff] }
0x1603   :  { %2881 = vmatpush3.bf16.msra.mxu0 %v2880_v13 }
0x16c9   :  { %v2719_v31 = vpop.f32.mrb[28].mxu0 }
0x16ca   :  { %2145 = vrot.lane.b32.xlu1 %v2719_v31, %s3126_s6  ;;  %v2135_v8 = vpop.f32.mrb[29].mxu0 }
0x173c   :  { %v2146_v37 = vpop.permute.xlu1 %2145 }
0x173d   :  { %v2148_v39 = vsel %vm152_vm1, %v2135_v8, %v2146_v37 }
0x173e   :  { %2737 = vmatmul.mubr.msk.f32.vlgmr.msra.gmra.mrb[20].mxu1 %vm239_vm2, %v2148_v39 }
0x1811   :  { %v2233_v43 = vpop.f32.mrb[20].mxu1 }
0x1812   :  { %v2234_v44 = vadd.f32 %v2428_v42, %v2233_v43  ;;  %v2738_v38 = vpop.f32.mrb[21].mxu1 }
0x1814   :  { %v2237_v36 = vmax.f32 %v2234_v44, 0.0 }
0x1816   :  { %2756 = vmatmul.mubr.msk.f32.vlgmr.msra.gmra.mrb[30].mxu0 %vm239_vm2, %v2237_v36 }
0x18e9   :  { %v2322_v32 = vpop.f32.mrb[30].mxu0 }
0x18ea   :  { %v2323_v41 = vadd.f32 %v2430_v1, %v2322_v32  ;;  %v2757_v35 = vpop.f32.mrb[31].mxu0 }
0x18ec   :  { %v2326_v46 = vmax.f32 %v2323_v41, 0.0 }
0x18ee   :  { %v2334_v47 = vmul.f32 %v2432_v45, %v2326_v46 }
0x18f0   :  { %v2335_v48 = vsel %vm239_vm2, %v2334_v47, 0.0 }
0x18f1   :  { %2336 = vadd.xlane.f32.xlu0 %v2335_v48 }
0x197e   :  { %v2337_v50 = vpop.xlane.xlu0 %2336 }
0x197f   :  { %v2345_v51 = vadd.f32 %v2433_v49, %v2337_v50 }
0x1981   :  { %v2434_v52 = vmul.f32 -1.442695, %v2345_v51 }
0x1983   :  { %3039 = vpow2.f32 %v2434_v52 }
0x198d   :  { %v3040_v53 = vpop.eup %3039 }
0x198e   :  { %v2349_v54 = vadd.f32 1.0, %v3040_v53 }
0x1990   :  { %3041 = vrcp.f32 %v2349_v54 }
0x199a   :  { %v3042_v56 = vpop.eup %3041 }
0x199b   :  { %2354 = vperm.xlu1 %2899, %v3042_v56  }
0x1a1a   :  { %v2355_v57 = vpop.permute.xlu1 %2354 }
0x1a1b   :  { %2357 = vst [vmem:[%s3674_s13] sm:$0xff] %v2355_v57 }
0x1a1c   :  { %2362 = vsyncpa [#allocation5], 1 }
0x1a1d   :  { %2363 = vsyncpa [#allocation7], 1 }

</bundles_post_ra>
